<compile_context>
chip_gen: v7x
topology: tpu7x:2x2x1
jax: 0.10.0
libtpu: 0.0.40
codegen_flags: <defaults>
</compile_context>

<pallas_src>
import functools

import jax
import jax.numpy as jnp
from jax.experimental import pallas as pl
from jax.experimental.pallas import tpu as pltpu

_LANE = 128      # lane width: channel dims are padded to this inside the kernel
_LM = 8          # sublane-aligned left margin of the halo buffer (>= 1 pad col)
_EPS = 1e-5      # PyTorch BatchNorm2d default eps


def _round_up(x, m):
    return (x + m - 1) // m * m


def _fold_bn(bn_params, eps=_EPS):
    gamma, beta, mean, var = bn_params
    scale = gamma / jnp.sqrt(var + eps)
    shift = beta - mean * scale          # == BNAndPadLayer pad_values
    return scale, shift


# --------------------------- fused RepConv kernel -----------------------------
def _repconv_kernel(x_ref, w1_ref, dw_ref, w2_ref, sh2_ref, o_ref, halo_ref,
                    *, H, W, RC):
    cp = w1_ref.shape[-1]
    w_halo = halo_ref.shape[1]

    # ---- zero only the halo border (every step: cheap + megacore-safe) --------
    halo_ref[0:1, :, :] = jnp.zeros((1, w_halo, cp), jnp.float32)
    halo_ref[H + 1:H + 2, :, :] = jnp.zeros((1, w_halo, cp), jnp.float32)
    halo_ref[1:H + 1, 0:_LM, :] = jnp.zeros((H, _LM, cp), jnp.float32)
    halo_ref[1:H + 1, _LM + W:w_halo, :] = jnp.zeros(
        (H, w_halo - _LM - W, cp), jnp.float32)

    # ---- 1x1 conv #1 (BN1 scale pre-folded into weight), bf16 MXU / f32 acc ---
    y1 = jnp.dot(x_ref[0], w1_ref[...], preferred_element_type=jnp.float32)
    halo_ref[1:H + 1, _LM:_LM + W, :] = y1.reshape(H, W, cp)     # aligned store
    # BN1's shift (== pad value) is NOT added here: it is folded through the
    # linear depthwise + conv2 into sh2 outside the kernel, so the zero border
    # already carries the correct pad contribution.

    dwv = dw_ref[...]                   # (9, Cp)       f32 depthwise taps
    w2 = w2_ref[...]                    # (Cp, Cout_p)  bf16, BN2 scale folded in
    sh2 = sh2_ref[...]                  # (1, Cout_p)   f32 effective shift

    # ---- row-chunked: 3x3 depthwise (VPU, f32) + 1x1 conv #2 (MXU) ------------
    c0 = _LM - 1                                          # halo column origin
    for r0 in range(0, H, RC):
        rc = min(RC, H - r0)
        acc = halo_ref[r0:r0 + rc, c0:c0 + W, :] * dwv[0].reshape(1, 1, cp)
        for kh in range(3):
            for kw in range(3):
                if kh == 0 and kw == 0:
                    continue
                tap = halo_ref[r0 + kh:r0 + kh + rc, c0 + kw:c0 + kw + W, :]
                acc = acc + tap * dwv[kh * 3 + kw].reshape(1, 1, cp)
        y = jnp.dot(acc.reshape(rc * W, cp).astype(jnp.bfloat16), w2,
                    preferred_element_type=jnp.float32)          # (rc*W, Cout_p)
        o_ref[0, r0 * W:(r0 + rc) * W, :] = y + sh2              # lane-dense store


# ------------------------------ operand prep ----------------------------------
def _prepare_operands(params):
    """Torch-layout weights -> folded, lane-padded kernel operands."""
    # conv1x1 #1: torch (Cin, Cin, 1, 1) -> (in, out), BN1 scale folded in.
    w1 = params["conv1x1_w"][:, :, 0, 0].T
    s1, sh1 = _fold_bn(params["bn1"])
    w1s = w1 * s1[None, :]
    # depthwise 3x3: torch (Cin, 1, 3, 3) -> (3, 3, Cin)
    dw = params["dw_w"][:, 0].transpose(1, 2, 0)
    # conv1x1 #2: torch (Cout, Cin, 1, 1) -> (in, out), BN2 scale folded in.
    w2 = params["pw2_w"][:, :, 0, 0].T
    s2, sh2 = _fold_bn(params["bn2"])
    w2s = w2 * s2[None, :]

    # Fold BN1's shift (== pad value, added uniformly to every padded pixel)
    # through the linear depthwise and conv2 into the BN2 shift.
    dwsum = dw.sum(axis=(0, 1))                                   # (Cin,)
    sh2_eff = sh2 + (sh1 * dwsum) @ w2s                           # (Cout,)

    cin = w1.shape[0]
    cout = w2.shape[1]
    cp = _round_up(cin, _LANE)
    coutp = _round_up(cout, _LANE)

    w1p = jnp.pad(w1s, ((0, 0), (0, cp - cin))).astype(jnp.bfloat16)          # (Cin, Cp)
    dwp = jnp.pad(dw.reshape(9, cin), ((0, 0), (0, cp - cin)))                # (9, Cp) f32
    w2p = jnp.pad(w2s, ((0, cp - cin), (0, coutp - cout))).astype(jnp.bfloat16)  # (Cp, Coutp)
    sh2p = jnp.pad(sh2_eff, (0, coutp - cout)).reshape(1, coutp)              # (1, Coutp) f32
    return w1p, dwp, w2p, sh2p


# ------------------------------ public wrapper --------------------------------
def repconv_forward(x_nchw, params):
    n, cin, h, w = x_nchw.shape
    cout = params["pw2_w"].shape[0]
    w1p, dwp, w2p, sh2p = _prepare_operands(params)
    cp = w1p.shape[1]
    coutp = w2p.shape[1]

    # NCHW -> NHWC -> (N, H*W, Cin) in bf16: kernel sees a flat, lane-friendly x.
    x = jnp.transpose(x_nchw, (0, 2, 3, 1)).reshape(n, h * w, cin)
    x = x.astype(jnp.bfloat16)

    w_halo = _LM + _round_up(w + 1, 8)                   # cols actually read + pad
    rc_rows = max(1, min(h, (128 + w - 1) // w))         # ~128 matmul rows / chunk

    # Size the VMEM limit from the real buffers (halo + double-buffered I/O + W).
    halo_bytes = (h + 2) * w_halo * cp * 4
    io_bytes = 2 * (h * w * cin * 2) + 2 * (h * w * coutp * 4)
    wt_bytes = 2 * (w1p.size * 2 + dwp.size * 4 + w2p.size * 2 + sh2p.size * 4)
    vmem_limit = int(min(max(halo_bytes + io_bytes + wt_bytes + (8 << 20),
                             32 << 20), 100 << 20))

    out = pl.pallas_call(
        functools.partial(_repconv_kernel, H=h, W=w, RC=rc_rows),
        out_shape=jax.ShapeDtypeStruct((n, h * w, coutp), jnp.float32),
        grid=(n,),
        in_specs=[
            pl.BlockSpec((1, h * w, cin), lambda i: (i, 0, 0)),
            pl.BlockSpec(w1p.shape, lambda i: (0, 0)),
            pl.BlockSpec(dwp.shape, lambda i: (0, 0)),
            pl.BlockSpec(w2p.shape, lambda i: (0, 0)),
            pl.BlockSpec(sh2p.shape, lambda i: (0, 0)),
        ],
        out_specs=pl.BlockSpec((1, h * w, coutp), lambda i: (i, 0, 0)),
        scratch_shapes=[pltpu.VMEM((h + 2, w_halo, cp), jnp.float32)],
        compiler_params=pltpu.CompilerParams(
            dimension_semantics=("parallel",),
            vmem_limit_bytes=vmem_limit,
        ),
    )(x, w1p, dwp, w2p, sh2p)

    out = out.reshape(n, h, w, coutp)[..., :cout]
    return jnp.transpose(out, (0, 3, 1, 2))                       # NCHW


# -------------------------- pure-JAX f32 reference ----------------------------
def repconv_reference(x_nchw, params):
    x = jnp.transpose(x_nchw, (0, 2, 3, 1))                       # NHWC
    n, h, w, _ = x.shape
    w1 = params["conv1x1_w"][:, :, 0, 0].T
    s1, sh1 = _fold_bn(params["bn1"])
    y = jnp.einsum("nhwi,io->nhwo", x, w1) * s1 + sh1             # conv1x1 + BN1
    yp = jnp.pad(y - sh1, ((0, 0), (1, 1), (1, 1), (0, 0))) + sh1  # pad with shift
    dw = params["dw_w"][:, 0].transpose(1, 2, 0)                  # (3, 3, Cin)
    y3 = jnp.zeros_like(y)
    for kh in range(3):
        for kw in range(3):
            y3 = y3 + yp[:, kh:kh + h, kw:kw + w, :] * dw[kh, kw]  # depthwise valid
    w2 = params["pw2_w"][:, :, 0, 0].T
    s2, sh2 = _fold_bn(params["bn2"])
    y5 = jnp.einsum("nhwi,io->nhwo", y3, w2) * s2 + sh2           # conv1x1 + BN2
    return jnp.transpose(y5, (0, 3, 1, 2))


# ---------------------------- deterministic params ----------------------------
def init_params(key, cin, cout):
    ks = jax.random.split(key, 5)

    def bn(k, c):
        k1, k2, k3, k4 = jax.random.split(k, 4)
        gamma = 1.0 + 0.1 * jax.random.normal(k1, (c,), jnp.float32)
        beta = 0.1 * jax.random.normal(k2, (c,), jnp.float32)
        mean = 0.1 * jax.random.normal(k3, (c,), jnp.float32)
        var = 1.0 + 0.1 * jax.random.uniform(k4, (c,), jnp.float32)
        return gamma, beta, mean, var

    return {
        "conv1x1_w": 0.3 * jax.random.normal(ks[0], (cin, cin, 1, 1), jnp.float32),
        "bn1": bn(ks[1], cin),
        "dw_w": 0.3 * jax.random.normal(ks[2], (cin, 1, 3, 3), jnp.float32),
        "pw2_w": 0.3 * jax.random.normal(ks[3], (cout, cin, 1, 1), jnp.float32),
        "bn2": bn(ks[4], cout),
    }


if __name__ == "__main__":
    key = jax.random.PRNGKey(0)
    kx, kp = jax.random.split(key)
    B, Cin, Cout, H, W = 2, 4, 8, 16, 16
    x = jax.random.normal(kx, (B, Cin, H, W), jnp.float32)
    params = init_params(kp, Cin, Cout)

    out = jax.jit(repconv_forward)(x, params)
    out = jax.block_until_ready(out)

    assert out.shape == (B, Cout, H, W)
    assert bool(jnp.all(jnp.isfinite(out)))

    ref = repconv_reference(x, params)
    err = float(jnp.max(jnp.abs(out - ref)))
    assert err < 1e-1, f"max abs error vs reference: {err}"
    print("KERNEL_OK")
</pallas_src>

<mosaic_0001>
module attributes {stable_mosaic.version = 11 : i64} {
  func.func @_repconv_kernel(%arg0: i32, %arg1: memref<1x256x4xbf16, #tpu.memory_space<vmem>>, %arg2: memref<4x128xbf16, #tpu.memory_space<vmem>>, %arg3: memref<9x128xf32, #tpu.memory_space<vmem>>, %arg4: memref<128x128xbf16, #tpu.memory_space<vmem>>, %arg5: memref<1x128xf32, #tpu.memory_space<vmem>>, %arg6: memref<1x256x128xf32, #tpu.memory_space<vmem>>, %arg7: memref<18x32x128xf32, #tpu.memory_space<vmem>>) attributes {dimension_semantics = [#tpu.dimension_semantics<parallel>], iteration_bounds = array<i64: 2>, scalar_prefetch = 0 : i64, scratch_operands = 1 : i64, tpu.core_type = #tpu.core_type<tc>, window_params = [{transform_indices = @transform_0, window_bounds = array<i64: 1, 256, 4>}, {pipeline_mode = #tpu.pipeline_mode<synchronous>, transform_indices = @transform_1, window_bounds = array<i64: 4, 128>}, {pipeline_mode = #tpu.pipeline_mode<synchronous>, transform_indices = @transform_2, window_bounds = array<i64: 9, 128>}, {pipeline_mode = #tpu.pipeline_mode<synchronous>, transform_indices = @transform_3, window_bounds = array<i64: 128, 128>}, {pipeline_mode = #tpu.pipeline_mode<synchronous>, transform_indices = @transform_4, window_bounds = array<i64: 1, 128>}, {transform_indices = @transform_5, window_bounds = array<i64: 1, 256, 128>}]} {
    %cst = arith.constant 0.000000e+00 : f32
    %0 = vector.broadcast %cst : f32 to vector<1x32x128xf32>
    %c0 = arith.constant 0 : index
    %c0_0 = arith.constant 0 : index
    %c0_1 = arith.constant 0 : index
    %1 = vector.load %arg7[%c0, %c0_0, %c0_1] : memref<18x32x128xf32, #tpu.memory_space<vmem>>, vector<1x32x128xf32>
    tpu.vector_store %arg7[%c0, %c0_0, %c0_1], %0 {strides = array<i32>} : memref<18x32x128xf32, #tpu.memory_space<vmem>>, vector<1x32x128xf32>,
    %cst_2 = arith.constant 0.000000e+00 : f32
    %2 = vector.broadcast %cst_2 : f32 to vector<1x32x128xf32>
    %c17 = arith.constant 17 : index
    %c0_3 = arith.constant 0 : index
    %c0_4 = arith.constant 0 : index
    %3 = vector.load %arg7[%c17, %c0_3, %c0_4] : memref<18x32x128xf32, #tpu.memory_space<vmem>>, vector<1x32x128xf32>
    tpu.vector_store %arg7[%c17, %c0_3, %c0_4], %2 {strides = array<i32>} : memref<18x32x128xf32, #tpu.memory_space<vmem>>, vector<1x32x128xf32>,
    %cst_5 = arith.constant 0.000000e+00 : f32
    %4 = vector.broadcast %cst_5 : f32 to vector<16x8x128xf32>
    %c1 = arith.constant 1 : index
    %c0_6 = arith.constant 0 : index
    %c0_7 = arith.constant 0 : index
    %5 = vector.load %arg7[%c1, %c0_6, %c0_7] : memref<18x32x128xf32, #tpu.memory_space<vmem>>, vector<16x8x128xf32>
    tpu.vector_store %arg7[%c1, %c0_6, %c0_7], %4 {strides = array<i32>} : memref<18x32x128xf32, #tpu.memory_space<vmem>>, vector<16x8x128xf32>,
    %cst_8 = arith.constant 0.000000e+00 : f32
    %6 = vector.broadcast %cst_8 : f32 to vector<16x8x128xf32>
    %c1_9 = arith.constant 1 : index
    %c24 = arith.constant 24 : index
    %c0_10 = arith.constant 0 : index
    %7 = vector.load %arg7[%c1_9, %c24, %c0_10] : memref<18x32x128xf32, #tpu.memory_space<vmem>>, vector<16x8x128xf32>
    tpu.vector_store %arg7[%c1_9, %c24, %c0_10], %6 {strides = array<i32>} : memref<18x32x128xf32, #tpu.memory_space<vmem>>, vector<16x8x128xf32>,
    %c0_11 = arith.constant 0 : index
    %c0_12 = arith.constant 0 : index
    %c0_13 = arith.constant 0 : index
    %8 = vector.load %arg1[%c0_11, %c0_12, %c0_13] : memref<1x256x4xbf16, #tpu.memory_space<vmem>>, vector<1x256x4xbf16>
    %9 = vector.shape_cast %8 : vector<1x256x4xbf16> to vector<256x4xbf16>
    %c0_14 = arith.constant 0 : index
    %c0_15 = arith.constant 0 : index
    %10 = vector.load %arg2[%c0_14, %c0_15] : memref<4x128xbf16, #tpu.memory_space<vmem>>, vector<4x128xbf16>
    %cst_16 = arith.constant dense<0.000000e+00> : vector<256x128xf32>
    %11 = tpu.matmul %9, %10, %cst_16 {dimension_numbers = #tpu.dot_dimension_numbers<[1], [0], [0], [1], [0, 0, 1, 1], [], []>} : vector<256x4xbf16>, vector<4x128xbf16>, vector<256x128xf32> -> vector<256x128xf32>
    %12 = vector.shape_cast %11 : vector<256x128xf32> to vector<16x16x128xf32>
    %c1_17 = arith.constant 1 : index
    %c8 = arith.constant 8 : index
    %c0_18 = arith.constant 0 : index
    %13 = vector.load %arg7[%c1_17, %c8, %c0_18] : memref<18x32x128xf32, #tpu.memory_space<vmem>>, vector<16x16x128xf32>
    tpu.vector_store %arg7[%c1_17, %c8, %c0_18], %12 {strides = array<i32>} : memref<18x32x128xf32, #tpu.memory_space<vmem>>, vector<16x16x128xf32>,
    %c0_19 = arith.constant 0 : index
    %c0_20 = arith.constant 0 : index
    %14 = vector.load %arg3[%c0_19, %c0_20] : memref<9x128xf32, #tpu.memory_space<vmem>>, vector<9x128xf32>
    %c0_21 = arith.constant 0 : index
    %c0_22 = arith.constant 0 : index
    %15 = vector.load %arg4[%c0_21, %c0_22] : memref<128x128xbf16, #tpu.memory_space<vmem>>, vector<128x128xbf16>
    %c0_23 = arith.constant 0 : index
    %c0_24 = arith.constant 0 : index
    %16 = vector.load %arg5[%c0_23, %c0_24] : memref<1x128xf32, #tpu.memory_space<vmem>>, vector<1x128xf32>
    %c0_25 = arith.constant 0 : index
    %c7 = arith.constant 7 : index
    %c0_26 = arith.constant 0 : index
    %17 = vector.load %arg7[%c0_25, %c7, %c0_26] : memref<18x32x128xf32, #tpu.memory_space<vmem>>, vector<8x16x128xf32>
    %18 = vector.extract_strided_slice %14 {offsets = [0, 0], sizes = [1, 128], strides = [1, 1]} : vector<9x128xf32> to vector<1x128xf32>
    %19 = vector.shape_cast %18 : vector<1x128xf32> to vector<128xf32>
    %20 = vector.shape_cast %19 : vector<128xf32> to vector<1x1x128xf32>
    %21 = vector.broadcast %20 : vector<1x1x128xf32> to vector<8x16x128xf32>
    %22 = arith.mulf %17, %21 : vector<8x16x128xf32>
    %c0_27 = arith.constant 0 : index
    %c8_28 = arith.constant 8 : index
    %c0_29 = arith.constant 0 : index
    %23 = vector.load %arg7[%c0_27, %c8_28, %c0_29] : memref<18x32x128xf32, #tpu.memory_space<vmem>>, vector<8x16x128xf32>
    %24 = vector.extract_strided_slice %14 {offsets = [1, 0], sizes = [1, 128], strides = [1, 1]} : vector<9x128xf32> to vector<1x128xf32>
    %25 = vector.shape_cast %24 : vector<1x128xf32> to vector<128xf32>
    %26 = vector.shape_cast %25 : vector<128xf32> to vector<1x1x128xf32>
    %27 = vector.broadcast %26 : vector<1x1x128xf32> to vector<8x16x128xf32>
    %28 = arith.mulf %23, %27 : vector<8x16x128xf32>
    %29 = arith.addf %22, %28 : vector<8x16x128xf32>
    %c0_30 = arith.constant 0 : index
    %c9 = arith.constant 9 : index
    %c0_31 = arith.constant 0 : index
    %30 = vector.load %arg7[%c0_30, %c9, %c0_31] : memref<18x32x128xf32, #tpu.memory_space<vmem>>, vector<8x16x128xf32>
    %31 = vector.extract_strided_slice %14 {offsets = [2, 0], sizes = [1, 128], strides = [1, 1]} : vector<9x128xf32> to vector<1x128xf32>
    %32 = vector.shape_cast %31 : vector<1x128xf32> to vector<128xf32>
    %33 = vector.shape_cast %32 : vector<128xf32> to vector<1x1x128xf32>
    %34 = vector.broadcast %33 : vector<1x1x128xf32> to vector<8x16x128xf32>
    %35 = arith.mulf %30, %34 : vector<8x16x128xf32>
    %36 = arith.addf %29, %35 : vector<8x16x128xf32>
    %c1_32 = arith.constant 1 : index
    %c7_33 = arith.constant 7 : index
    %c0_34 = arith.constant 0 : index
    %37 = vector.load %arg7[%c1_32, %c7_33, %c0_34] : memref<18x32x128xf32, #tpu.memory_space<vmem>>, vector<8x16x128xf32>
    %38 = vector.extract_strided_slice %14 {offsets = [3, 0], sizes = [1, 128], strides = [1, 1]} : vector<9x128xf32> to vector<1x128xf32>
    %39 = vector.shape_cast %38 : vector<1x128xf32> to vector<128xf32>
    %40 = vector.shape_cast %39 : vector<128xf32> to vector<1x1x128xf32>
    %41 = vector.broadcast %40 : vector<1x1x128xf32> to vector<8x16x128xf32>
    %42 = arith.mulf %37, %41 : vector<8x16x128xf32>
    %43 = arith.addf %36, %42 : vector<8x16x128xf32>
    %c1_35 = arith.constant 1 : index
    %c8_36 = arith.constant 8 : index
    %c0_37 = arith.constant 0 : index
    %44 = vector.load %arg7[%c1_35, %c8_36, %c0_37] : memref<18x32x128xf32, #tpu.memory_space<vmem>>, vector<8x16x128xf32>
    %45 = vector.extract_strided_slice %14 {offsets = [4, 0], sizes = [1, 128], strides = [1, 1]} : vector<9x128xf32> to vector<1x128xf32>
    %46 = vector.shape_cast %45 : vector<1x128xf32> to vector<128xf32>
    %47 = vector.shape_cast %46 : vector<128xf32> to vector<1x1x128xf32>
    %48 = vector.broadcast %47 : vector<1x1x128xf32> to vector<8x16x128xf32>
    %49 = arith.mulf %44, %48 : vector<8x16x128xf32>
    %50 = arith.addf %43, %49 : vector<8x16x128xf32>
    %c1_38 = arith.constant 1 : index
    %c9_39 = arith.constant 9 : index
    %c0_40 = arith.constant 0 : index
    %51 = vector.load %arg7[%c1_38, %c9_39, %c0_40] : memref<18x32x128xf32, #tpu.memory_space<vmem>>, vector<8x16x128xf32>
    %52 = vector.extract_strided_slice %14 {offsets = [5, 0], sizes = [1, 128], strides = [1, 1]} : vector<9x128xf32> to vector<1x128xf32>
    %53 = vector.shape_cast %52 : vector<1x128xf32> to vector<128xf32>
    %54 = vector.shape_cast %53 : vector<128xf32> to vector<1x1x128xf32>
    %55 = vector.broadcast %54 : vector<1x1x128xf32> to vector<8x16x128xf32>
    %56 = arith.mulf %51, %55 : vector<8x16x128xf32>
    %57 = arith.addf %50, %56 : vector<8x16x128xf32>
    %c2 = arith.constant 2 : index
    %c7_41 = arith.constant 7 : index
    %c0_42 = arith.constant 0 : index
    %58 = vector.load %arg7[%c2, %c7_41, %c0_42] : memref<18x32x128xf32, #tpu.memory_space<vmem>>, vector<8x16x128xf32>
    %59 = vector.extract_strided_slice %14 {offsets = [6, 0], sizes = [1, 128], strides = [1, 1]} : vector<9x128xf32> to vector<1x128xf32>
    %60 = vector.shape_cast %59 : vector<1x128xf32> to vector<128xf32>
    %61 = vector.shape_cast %60 : vector<128xf32> to vector<1x1x128xf32>
    %62 = vector.broadcast %61 : vector<1x1x128xf32> to vector<8x16x128xf32>
    %63 = arith.mulf %58, %62 : vector<8x16x128xf32>
    %64 = arith.addf %57, %63 : vector<8x16x128xf32>
    %c2_43 = arith.constant 2 : index
    %c8_44 = arith.constant 8 : index
    %c0_45 = arith.constant 0 : index
    %65 = vector.load %arg7[%c2_43, %c8_44, %c0_45] : memref<18x32x128xf32, #tpu.memory_space<vmem>>, vector<8x16x128xf32>
    %66 = vector.extract_strided_slice %14 {offsets = [7, 0], sizes = [1, 128], strides = [1, 1]} : vector<9x128xf32> to vector<1x128xf32>
    %67 = vector.shape_cast %66 : vector<1x128xf32> to vector<128xf32>
    %68 = vector.shape_cast %67 : vector<128xf32> to vector<1x1x128xf32>
    %69 = vector.broadcast %68 : vector<1x1x128xf32> to vector<8x16x128xf32>
    %70 = arith.mulf %65, %69 : vector<8x16x128xf32>
    %71 = arith.addf %64, %70 : vector<8x16x128xf32>
    %c2_46 = arith.constant 2 : index
    %c9_47 = arith.constant 9 : index
    %c0_48 = arith.constant 0 : index
    %72 = vector.load %arg7[%c2_46, %c9_47, %c0_48] : memref<18x32x128xf32, #tpu.memory_space<vmem>>, vector<8x16x128xf32>
    %73 = vector.extract_strided_slice %14 {offsets = [8, 0], sizes = [1, 128], strides = [1, 1]} : vector<9x128xf32> to vector<1x128xf32>
    %74 = vector.shape_cast %73 : vector<1x128xf32> to vector<128xf32>
    %75 = vector.shape_cast %74 : vector<128xf32> to vector<1x1x128xf32>
    %76 = vector.broadcast %75 : vector<1x1x128xf32> to vector<8x16x128xf32>
    %77 = arith.mulf %72, %76 : vector<8x16x128xf32>
    %78 = arith.addf %71, %77 : vector<8x16x128xf32>
    %79 = vector.shape_cast %78 : vector<8x16x128xf32> to vector<128x128xf32>
    %80 = arith.truncf %79 : vector<128x128xf32> to vector<128x128xbf16>
    %cst_49 = arith.constant dense<0.000000e+00> : vector<128x128xf32>
    %81 = tpu.matmul %80, %15, %cst_49 {dimension_numbers = #tpu.dot_dimension_numbers<[1], [0], [0], [1], [0, 0, 1, 1], [], []>} : vector<128x128xbf16>, vector<128x128xbf16>, vector<128x128xf32> -> vector<128x128xf32>
    %82 = vector.broadcast %16 : vector<1x128xf32> to vector<128x128xf32>
    %83 = arith.addf %81, %82 : vector<128x128xf32>
    %c0_50 = arith.constant 0 : index
    %c0_51 = arith.constant 0 : index
    %c0_52 = arith.constant 0 : index
    %84 = vector.load %arg6[%c0_50, %c0_51, %c0_52] : memref<1x256x128xf32, #tpu.memory_space<vmem>>, vector<1x128x128xf32>
    %85 = vector.shape_cast %84 : vector<1x128x128xf32> to vector<128x128xf32>
    %86 = vector.shape_cast %83 : vector<128x128xf32> to vector<1x128x128xf32>
    tpu.vector_store %arg6[%c0_50, %c0_51, %c0_52], %86 {strides = array<i32>} : memref<1x256x128xf32, #tpu.memory_space<vmem>>, vector<1x128x128xf32>,
    %c8_53 = arith.constant 8 : index
    %c7_54 = arith.constant 7 : index
    %c0_55 = arith.constant 0 : index
    %87 = vector.load %arg7[%c8_53, %c7_54, %c0_55] : memref<18x32x128xf32, #tpu.memory_space<vmem>>, vector<8x16x128xf32>
    %88 = vector.extract_strided_slice %14 {offsets = [0, 0], sizes = [1, 128], strides = [1, 1]} : vector<9x128xf32> to vector<1x128xf32>
    %89 = vector.shape_cast %88 : vector<1x128xf32> to vector<128xf32>
    %90 = vector.shape_cast %89 : vector<128xf32> to vector<1x1x128xf32>
    %91 = vector.broadcast %90 : vector<1x1x128xf32> to vector<8x16x128xf32>
    %92 = arith.mulf %87, %91 : vector<8x16x128xf32>
    %c8_56 = arith.constant 8 : index
    %c8_57 = arith.constant 8 : index
    %c0_58 = arith.constant 0 : index
    %93 = vector.load %arg7[%c8_56, %c8_57, %c0_58] : memref<18x32x128xf32, #tpu.memory_space<vmem>>, vector<8x16x128xf32>
    %94 = vector.extract_strided_slice %14 {offsets = [1, 0], sizes = [1, 128], strides = [1, 1]} : vector<9x128xf32> to vector<1x128xf32>
    %95 = vector.shape_cast %94 : vector<1x128xf32> to vector<128xf32>
    %96 = vector.shape_cast %95 : vector<128xf32> to vector<1x1x128xf32>
    %97 = vector.broadcast %96 : vector<1x1x128xf32> to vector<8x16x128xf32>
    %98 = arith.mulf %93, %97 : vector<8x16x128xf32>
    %99 = arith.addf %92, %98 : vector<8x16x128xf32>
    %c8_59 = arith.constant 8 : index
    %c9_60 = arith.constant 9 : index
    %c0_61 = arith.constant 0 : index
    %100 = vector.load %arg7[%c8_59, %c9_60, %c0_61] : memref<18x32x128xf32, #tpu.memory_space<vmem>>, vector<8x16x128xf32>
    %101 = vector.extract_strided_slice %14 {offsets = [2, 0], sizes = [1, 128], strides = [1, 1]} : vector<9x128xf32> to vector<1x128xf32>
    %102 = vector.shape_cast %101 : vector<1x128xf32> to vector<128xf32>
    %103 = vector.shape_cast %102 : vector<128xf32> to vector<1x1x128xf32>
    %104 = vector.broadcast %103 : vector<1x1x128xf32> to vector<8x16x128xf32>
    %105 = arith.mulf %100, %104 : vector<8x16x128xf32>
    %106 = arith.addf %99, %105 : vector<8x16x128xf32>
    %c9_62 = arith.constant 9 : index
    %c7_63 = arith.constant 7 : index
    %c0_64 = arith.constant 0 : index
    %107 = vector.load %arg7[%c9_62, %c7_63, %c0_64] : memref<18x32x128xf32, #tpu.memory_space<vmem>>, vector<8x16x128xf32>
    %108 = vector.extract_strided_slice %14 {offsets = [3, 0], sizes = [1, 128], strides = [1, 1]} : vector<9x128xf32> to vector<1x128xf32>
    %109 = vector.shape_cast %108 : vector<1x128xf32> to vector<128xf32>
    %110 = vector.shape_cast %109 : vector<128xf32> to vector<1x1x128xf32>
    %111 = vector.broadcast %110 : vector<1x1x128xf32> to vector<8x16x128xf32>
    %112 = arith.mulf %107, %111 : vector<8x16x128xf32>
    %113 = arith.addf %106, %112 : vector<8x16x128xf32>
    %c9_65 = arith.constant 9 : index
    %c8_66 = arith.constant 8 : index
    %c0_67 = arith.constant 0 : index
    %114 = vector.load %arg7[%c9_65, %c8_66, %c0_67] : memref<18x32x128xf32, #tpu.memory_space<vmem>>, vector<8x16x128xf32>
    %115 = vector.extract_strided_slice %14 {offsets = [4, 0], sizes = [1, 128], strides = [1, 1]} : vector<9x128xf32> to vector<1x128xf32>
    %116 = vector.shape_cast %115 : vector<1x128xf32> to vector<128xf32>
    %117 = vector.shape_cast %116 : vector<128xf32> to vector<1x1x128xf32>
    %118 = vector.broadcast %117 : vector<1x1x128xf32> to vector<8x16x128xf32>
    %119 = arith.mulf %114, %118 : vector<8x16x128xf32>
    %120 = arith.addf %113, %119 : vector<8x16x128xf32>
    %c9_68 = arith.constant 9 : index
    %c9_69 = arith.constant 9 : index
    %c0_70 = arith.constant 0 : index
    %121 = vector.load %arg7[%c9_68, %c9_69, %c0_70] : memref<18x32x128xf32, #tpu.memory_space<vmem>>, vector<8x16x128xf32>
    %122 = vector.extract_strided_slice %14 {offsets = [5, 0], sizes = [1, 128], strides = [1, 1]} : vector<9x128xf32> to vector<1x128xf32>
    %123 = vector.shape_cast %122 : vector<1x128xf32> to vector<128xf32>
    %124 = vector.shape_cast %123 : vector<128xf32> to vector<1x1x128xf32>
    %125 = vector.broadcast %124 : vector<1x1x128xf32> to vector<8x16x128xf32>
    %126 = arith.mulf %121, %125 : vector<8x16x128xf32>
    %127 = arith.addf %120, %126 : vector<8x16x128xf32>
    %c10 = arith.constant 10 : index
    %c7_71 = arith.constant 7 : index
    %c0_72 = arith.constant 0 : index
    %128 = vector.load %arg7[%c10, %c7_71, %c0_72] : memref<18x32x128xf32, #tpu.memory_space<vmem>>, vector<8x16x128xf32>
    %129 = vector.extract_strided_slice %14 {offsets = [6, 0], sizes = [1, 128], strides = [1, 1]} : vector<9x128xf32> to vector<1x128xf32>
    %130 = vector.shape_cast %129 : vector<1x128xf32> to vector<128xf32>
    %131 = vector.shape_cast %130 : vector<128xf32> to vector<1x1x128xf32>
    %132 = vector.broadcast %131 : vector<1x1x128xf32> to vector<8x16x128xf32>
    %133 = arith.mulf %128, %132 : vector<8x16x128xf32>
    %134 = arith.addf %127, %133 : vector<8x16x128xf32>
    %c10_73 = arith.constant 10 : index
    %c8_74 = arith.constant 8 : index
    %c0_75 = arith.constant 0 : index
    %135 = vector.load %arg7[%c10_73, %c8_74, %c0_75] : memref<18x32x128xf32, #tpu.memory_space<vmem>>, vector<8x16x128xf32>
    %136 = vector.extract_strided_slice %14 {offsets = [7, 0], sizes = [1, 128], strides = [1, 1]} : vector<9x128xf32> to vector<1x128xf32>
    %137 = vector.shape_cast %136 : vector<1x128xf32> to vector<128xf32>
    %138 = vector.shape_cast %137 : vector<128xf32> to vector<1x1x128xf32>
    %139 = vector.broadcast %138 : vector<1x1x128xf32> to vector<8x16x128xf32>
    %140 = arith.mulf %135, %139 : vector<8x16x128xf32>
    %141 = arith.addf %134, %140 : vector<8x16x128xf32>
    %c10_76 = arith.constant 10 : index
    %c9_77 = arith.constant 9 : index
    %c0_78 = arith.constant 0 : index
    %142 = vector.load %arg7[%c10_76, %c9_77, %c0_78] : memref<18x32x128xf32, #tpu.memory_space<vmem>>, vector<8x16x128xf32>
    %143 = vector.extract_strided_slice %14 {offsets = [8, 0], sizes = [1, 128], strides = [1, 1]} : vector<9x128xf32> to vector<1x128xf32>
    %144 = vector.shape_cast %143 : vector<1x128xf32> to vector<128xf32>
    %145 = vector.shape_cast %144 : vector<128xf32> to vector<1x1x128xf32>
    %146 = vector.broadcast %145 : vector<1x1x128xf32> to vector<8x16x128xf32>
    %147 = arith.mulf %142, %146 : vector<8x16x128xf32>
    %148 = arith.addf %141, %147 : vector<8x16x128xf32>
    %149 = vector.shape_cast %148 : vector<8x16x128xf32> to vector<128x128xf32>
    %150 = arith.truncf %149 : vector<128x128xf32> to vector<128x128xbf16>
    %cst_79 = arith.constant dense<0.000000e+00> : vector<128x128xf32>
    %151 = tpu.matmul %150, %15, %cst_79 {dimension_numbers = #tpu.dot_dimension_numbers<[1], [0], [0], [1], [0, 0, 1, 1], [], []>} : vector<128x128xbf16>, vector<128x128xbf16>, vector<128x128xf32> -> vector<128x128xf32>
    %152 = vector.broadcast %16 : vector<1x128xf32> to vector<128x128xf32>
    %153 = arith.addf %151, %152 : vector<128x128xf32>
    %c0_80 = arith.constant 0 : index
    %c128 = arith.constant 128 : index
    %c0_81 = arith.constant 0 : index
    %154 = vector.load %arg6[%c0_80, %c128, %c0_81] : memref<1x256x128xf32, #tpu.memory_space<vmem>>, vector<1x128x128xf32>
    %155 = vector.shape_cast %154 : vector<1x128x128xf32> to vector<128x128xf32>
    %156 = vector.shape_cast %153 : vector<128x128xf32> to vector<1x128x128xf32>
    tpu.vector_store %arg6[%c0_80, %c128, %c0_81], %156 {strides = array<i32>} : memref<1x256x128xf32, #tpu.memory_space<vmem>>, vector<1x128x128xf32>,
    return
  }
  func.func @transform_0(%arg0: i32) -> (i32, i32, i32) {
    %c0_i32 = arith.constant 0 : i32
    %c0_i32_0 = arith.constant 0 : i32
    %c0_i32_1 = arith.constant 0 : i32
    return %arg0, %c0_i32, %c0_i32_0 : i32, i32, i32
  }
  func.func @transform_1(%arg0: i32) -> (i32, i32) {
    %c0_i32 = arith.constant 0 : i32
    %c0_i32_0 = arith.constant 0 : i32
    %c0_i32_1 = arith.constant 0 : i32
    return %c0_i32, %c0_i32_0 : i32, i32
  }
  func.func @transform_2(%arg0: i32) -> (i32, i32) {
    %c0_i32 = arith.constant 0 : i32
    %c0_i32_0 = arith.constant 0 : i32
    %c0_i32_1 = arith.constant 0 : i32
    return %c0_i32, %c0_i32_0 : i32, i32
  }
  func.func @transform_3(%arg0: i32) -> (i32, i32) {
    %c0_i32 = arith.constant 0 : i32
    %c0_i32_0 = arith.constant 0 : i32
    %c0_i32_1 = arith.constant 0 : i32
    return %c0_i32, %c0_i32_0 : i32, i32
  }
  func.func @transform_4(%arg0: i32) -> (i32, i32) {
    %c0_i32 = arith.constant 0 : i32
    %c0_i32_0 = arith.constant 0 : i32
    %c0_i32_1 = arith.constant 0 : i32
    return %c0_i32, %c0_i32_0 : i32, i32
  }
  func.func @transform_5(%arg0: i32) -> (i32, i32, i32) {
    %c0_i32 = arith.constant 0 : i32
    %c0_i32_0 = arith.constant 0 : i32
    %c0_i32_1 = arith.constant 0 : i32
    return %arg0, %c0_i32, %c0_i32_0 : i32, i32, i32
  }
}

</mosaic_0001>

<bundles_post_ra>
// kernel: repconv_forward.1
= control target key start
LH: loop header
LB: loop body
LE: loop exit
PB: predicated region body
PF: predicated region fallthrough
CT: control target
= control target key end

     0   :  { %s2162_s18 = smov 0   ;;  %s2942_s0 = inlined_call_operand.vmem [shape: bf16[2,256,4], index: 0, kind: input, shape index: {}]   ;;  %s2943_s1 = inlined_call_operand.vmem [shape: bf16[4,128], index: 1, kind: input, shape index: {}]   ;;  %s2944_s2 = inlined_call_operand.vmem [shape: f32[9,128], index: 2, kind: input, shape index: {}]   ;;  %s2945_s3 = inlined_call_operand.vmem [shape: bf16[128,128], index: 3, kind: input, shape index: {}]   ;;  %s2946_s4 = inlined_call_operand.vmem [shape: f32[1,128], index: 4, kind: input, shape index: {}]   ;;  %s2947_s5 = inlined_call_operand.vmem [shape: f32[2,256,128], index: 5, kind: output, shape index: {}]  }
   0x1 LB: > { %s1869_s19 = sadd.s32 4294967295, %s2129_s18   ;;  %p1873_p0 = scmp.ge.s32.totalorder %s2129_s18, 1  ;;  %s2129_s18 = sphi %s2162_s18, %s15_s18  }
   0x2   : > { %p187_p1 = scmp.lt.s32.totalorder %s2129_s18, 3 }
   0x4   : > { %p188_p2 = pnand %p1873_p0, %p187_p1 }
   0x6   : > { %191 = sbr.rel (%p188_p2) target bundleno = 603 (0x25b), region = 40 }
   0xd   : > { %v300_v0 = vld [vmem:[%s2943_s1] sm:$0x3]  ;;  %vm430_vm0 = vcmask 1041408   ;;  %p215_p3 = scmp.lt.s32.totalorder %s1869_s19, 1  ;;  %vm381_vm1 = vcmask 31744   ;;  %v2131_v19 = vmov 0.0   ;;  %v662_v27 = vlaneseq }
   0xe   : > { %2087 = vmatprep.subr.msk.bf16.mxu0 %vm430_vm0, %v300_v0  ;;  %v432_v1 = vsel %vm430_vm0, %v300_v0, 0  ;;  %v2216_v18 = vld [vmem:[%s2945_s3] sm:$0xff]   ;;  %226 = vst [vmem:[#allocation2] sm:$0xff] %v2131_v19  ;;  %227 = vst [vmem:[#allocation2 + $0x8] sm:$0xff] %v2131_v19  ;;  %v2225_v20 = vld [vmem:[%s2945_s3 + $0x8] sm:$0xff]  }
   0xf   : > { %1974 = vmatpush3.bf16.msra.mxu0 %v432_v1  ;;  %s2957_s19 = smov (!%p215_p3, %s1869_s19), 1  ;;  %228 = vst [vmem:[#allocation2 + $0x10] sm:$0xff] %v2131_v19  ;;  %229 = vst [vmem:[#allocation2 + $0x18] sm:$0xff] %v2131_v19  ;;  %2007 = vmatprep.subr.bf16.mxu1 %v2216_v18  ;;  %v2234_v21 = vld [vmem:[%s2945_s3 + $0x10] sm:$0xff]   ;;  %v2243_v22 = vld [vmem:[%s2945_s3 + $0x18] sm:$0xff]   ;;  %v663_v28 = vshrl.u32 %v662_v27, 7 }
  0x10   : > { %s1922_s22 = sshll.u32 %s2957_s19, 7  ;;  %236 = vst [vmem:[#allocation2 + $0x20] sm:$0xff] %v2131_v19  ;;  %237 = vst [vmem:[#allocation2 + $0x40] sm:$0xff] %v2131_v19  ;;  %2039 = vmatprep.subr.bf16.mxu0 %v2216_v18  ;;  %2008 = vmatpush3.bf16.msra.mxu1 %v2216_v18  ;;  %v2252_v23 = vld [vmem:[%s2945_s3 + $0x20] sm:$0xff]   ;;  %v2261_v24 = vld [vmem:[%s2945_s3 + $0x28] sm:$0xff]  }
  0x11   : > { %s2179_s25 = scalar_lea.vmem %s2942_s0, %s1922_s22  ;;  %252 = vst [vmem:[#allocation2 + $0x38] sm:$0xff] %v2131_v19  ;;  %253 = vst [vmem:[#allocation2 + $0x58] sm:$0xff] %v2131_v19  ;;  %2009 = vmatprep.subr.bf16.mxu1 %v2225_v20  ;;  %v2270_v25 = vld [vmem:[%s2945_s3 + $0x30] sm:$0xff]   ;;  %v2279_v26 = vld [vmem:[%s2945_s3 + $0x38] sm:$0xff]   ;;  %v664_v29 = vsub.s32 0, %v663_v28  ;;  %v700_v30 = vsub.s32 1, %v663_v28 }
  0x12   : > { %v2097_v2 = vld [vmem:[%s2179_s25] sm:$0xff]   ;;  %v2098_v3 = vld [vmem:[%s2179_s25 + $0x8] sm:$0xff]   ;;  %v2099_v4 = vld [vmem:[%s2179_s25 + $0x10] sm:$0xff]   ;;  %231 = vst [vmem:[#allocation2 + $0x220] sm:$0xff] %v2131_v19  ;;  %v752_v33 = vsub.s32 2, %v663_v28  ;;  %v856_v43 = vsub.s32 4, %v663_v28 }
  0x13   : > { %1975 = vmatprep.mubr.msk.bf16.mxu0 %vm381_vm1, %v2097_v2  ;;  %v2100_v5 = vld [vmem:[%s2179_s25 + $0x18] sm:$0xff]   ;;  %v2101_v6 = vld [vmem:[%s2179_s25 + $0x20] sm:$0xff]   ;;  %v2102_v7 = vld [vmem:[%s2179_s25 + $0x28] sm:$0xff]   ;;  %232 = vst [vmem:[#allocation2 + $0x228] sm:$0xff] %v2131_v19  ;;  %v1013_v44 = vsub.s32 7, %v663_v28  ;;  %v804_v47 = vsub.s32 3, %v663_v28 }
  0x14   : > { %1976 = vmatmul.mubr.msk.bf16.vlgmr.msra.gmra.mrb[0].mxu0 %vm381_vm1, %v2098_v3  ;;  %v2103_v8 = vld [vmem:[%s2179_s25 + $0x30] sm:$0xff]   ;;  %v2104_v9 = vld [vmem:[%s2179_s25 + $0x38] sm:$0xff]   ;;  %v2105_v10 = vld [vmem:[%s2179_s25 + $0x40] sm:$0xff]   ;;  %233 = vst [vmem:[#allocation2 + $0x230] sm:$0xff] %v2131_v19  ;;  %2010 = vmatpush3.bf16.msra.mxu1 %v2225_v20  ;;  %v908_v48 = vsub.s32 5, %v663_v28  ;;  %v961_v49 = vsub.s32 6, %v663_v28 }
  0x15   : > { %1979 = vmatprep.mubr.msk.bf16.mxu0 %vm381_vm1, %v2099_v4  ;;  %v2106_v11 = vld [vmem:[%s2179_s25 + $0x48] sm:$0xff]   ;;  %v2107_v12 = vld [vmem:[%s2179_s25 + $0x50] sm:$0xff]   ;;  %v2108_v13 = vld [vmem:[%s2179_s25 + $0x58] sm:$0xff]   ;;  %234 = vst [vmem:[#allocation2 + $0x238] sm:$0xff] %v2131_v19  ;;  %2040 = vmatpush3.bf16.msra.mxu0 %v2216_v18 }
  0x16   : > { %v2109_v14 = vld [vmem:[%s2179_s25 + $0x60] sm:$0xff]   ;;  %v2110_v15 = vld [vmem:[%s2179_s25 + $0x68] sm:$0xff]   ;;  %v2111_v16 = vld [vmem:[%s2179_s25 + $0x70] sm:$0xff]   ;;  %238 = vst [vmem:[#allocation2 + $0x60] sm:$0xff] %v2131_v19  ;;  %2041 = vmatprep.subr.bf16.mxu0 %v2225_v20  ;;  %2011 = vmatprep.subr.bf16.mxu1 %v2234_v21 }
  0x17   : > { %v2112_v17 = vld [vmem:[%s2179_s25 + $0x78] sm:$0xff]   ;;  %239 = vst [vmem:[#allocation2 + $0x80] sm:$0xff] %v2131_v19  ;;  %240 = vst [vmem:[#allocation2 + $0xa0] sm:$0xff] %v2131_v19  ;;  %v627_v31 = vld [vmem:[%s2944_s2] sm:$0xff]  ;;  %s1923_s25 = sshll.u32 %s2957_s19, 8 }
  0x18   : > { %241 = vst [vmem:[#allocation2 + $0xc0] sm:$0xff] %v2131_v19  ;;  %242 = vst [vmem:[#allocation2 + $0xe0] sm:$0xff] %v2131_v19  ;;  %2012 = vmatpush3.bf16.msra.mxu1 %v2234_v21  ;;  %v2289_v32 = vrot.slane %v627_v31, %v664_v29  ;;  %v646_v34 = vld [vmem:[#allocation2 + $0x7] sm:$0xff]  ;;  %v647_v35 = vld [vmem:[#allocation2 + $0xf] sm:$0xff]  ;;  %v2291_v36 = vrot.slane %v627_v31, %v700_v30  ;;  %v2296_v40 = vrot.slane %v627_v31, %v752_v33  ;;  %s2873_s30 = scalar_lea.vmem %s2947_s5, %s1923_s25 }
  0x19   : > { %243 = vst [vmem:[#allocation2 + $0x100] sm:$0xff] %v2131_v19  ;;  %244 = vst [vmem:[#allocation2 + $0x120] sm:$0xff] %v2131_v19  ;;  %2042 = vmatpush3.bf16.msra.mxu0 %v2225_v20  ;;  %2013 = vmatprep.subr.bf16.mxu1 %v2243_v22  ;;  %v734_v41 = vld [vmem:[#allocation2 + $0x9] sm:$0xff]  ;;  %v735_v42 = vld [vmem:[#allocation2 + $0x11] sm:$0xff]  ;;  %v2300_v56 = vrot.slane %v627_v31, %v856_v43  ;;  %v2302_v57 = vrot.slane %v627_v31, %v1013_v44 }
  0x1a   : > { %245 = vst [vmem:[#allocation2 + $0x140] sm:$0xff] %v2131_v19  ;;  %246 = vst [vmem:[#allocation2 + $0x160] sm:$0xff] %v2131_v19  ;;  %2043 = vmatprep.subr.bf16.mxu0 %v2234_v21  ;;  %v666_v37 = vmul.f32 %v2289_v32, %v646_v34  ;;  %v667_v38 = vmul.f32 %v2289_v32, %v647_v35  ;;  %v702_v39 = vmul.f32 0.0, %v2291_v36  ;;  %v2323_v4 = vld [vmem:[%s2944_s2 + $0x8] ss:$0 sm:$0xff] }
  0x1b   : > { %247 = vst [vmem:[#allocation2 + $0x180] sm:$0xff] %v2131_v19  ;;  %248 = vst [vmem:[#allocation2 + $0x1a0] sm:$0xff] %v2131_v19  ;;  %v754_v53 = vmul.f32 %v2296_v40, %v734_v41  ;;  %v755_v54 = vmul.f32 %v2296_v40, %v735_v42  ;;  %v2304_v58 = vrot.slane %v627_v31, %v804_v47 }
  0x1c   : > { %1980 = vmatmul.mubr.msk.bf16.gmra.mrb[4].mxu0 %vm381_vm1, %v2100_v5  ;;  %249 = vst [vmem:[#allocation2 + $0x1c0] sm:$0xff] %v2131_v19  ;;  %250 = vst [vmem:[#allocation2 + $0x1e0] sm:$0xff] %v2131_v19  ;;  %2014 = vmatpush3.bf16.msra.mxu1 %v2243_v22  ;;  %v718_v51 = vadd.f32 %v702_v39, %v666_v37  ;;  %v719_v52 = vadd.f32 %v702_v39, %v667_v38 }
  0x1d   : > { %1983 = vmatprep.mubr.msk.bf16.mxu0 %vm381_vm1, %v2101_v6  ;;  %251 = vst [vmem:[#allocation2 + $0x200] sm:$0xff] %v2131_v19  ;;  %254 = vst [vmem:[#allocation2 + $0x78] sm:$0xff] %v2131_v19  ;;  %2044 = vmatpush3.bf16.msra.mxu0 %v2234_v21  ;;  %v2306_v59 = vrot.slane %v627_v31, %v961_v49  ;;  %v2308_v62 = vrot.slane %v627_v31, %v908_v48 }
  0x1e   : > { %255 = vst [vmem:[#allocation2 + $0x98] sm:$0xff] %v2131_v19  ;;  %256 = vst [vmem:[#allocation2 + $0xb8] sm:$0xff] %v2131_v19  ;;  %2045 = vmatprep.subr.bf16.mxu0 %v2243_v22  ;;  %2015 = vmatprep.subr.bf16.mxu1 %v2252_v23  ;;  %v770_v60 = vadd.f32 %v754_v53, %v718_v51  ;;  %v771_v61 = vadd.f32 %v755_v54, %v719_v52 }
  0x1f   : > { %257 = vst [vmem:[#allocation2 + $0xd8] sm:$0xff] %v2131_v19  ;;  %258 = vst [vmem:[#allocation2 + $0xf8] sm:$0xff] %v2131_v19 }
  0x20   : > { %259 = vst [vmem:[#allocation2 + $0x118] sm:$0xff] %v2131_v19  ;;  %260 = vst [vmem:[#allocation2 + $0x138] sm:$0xff] %v2131_v19  ;;  %2016 = vmatpush3.bf16.msra.mxu1 %v2252_v23 }
  0x21   : > { %261 = vst [vmem:[#allocation2 + $0x158] sm:$0xff] %v2131_v19  ;;  %262 = vst [vmem:[#allocation2 + $0x178] sm:$0xff] %v2131_v19  ;;  %2046 = vmatpush3.bf16.msra.mxu0 %v2243_v22  ;;  %2017 = vmatprep.subr.bf16.mxu1 %v2261_v24 }
  0x22   : > { %263 = vst [vmem:[#allocation2 + $0x198] sm:$0xff] %v2131_v19  ;;  %264 = vst [vmem:[#allocation2 + $0x1b8] sm:$0xff] %v2131_v19  ;;  %2047 = vmatprep.subr.bf16.mxu0 %v2252_v23 }
  0x23   : > { %265 = vst [vmem:[#allocation2 + $0x1d8] sm:$0xff] %v2131_v19  ;;  %266 = vst [vmem:[#allocation2 + $0x1f8] sm:$0xff] %v2131_v19 }
  0x24   : > { %1984 = vmatmul.mubr.msk.bf16.gmra.mrb[8].mxu0 %vm381_vm1, %v2102_v7  ;;  %267 = vst [vmem:[#allocation2 + $0x218] sm:$0xff] %v2131_v19  ;;  %2018 = vmatpush3.bf16.msra.mxu1 %v2261_v24  ;;  %2952 = vst [vmem:[#allocation3_spill] sm:$0xff] %v2270_v25 }
  0x25   : > { %1987 = vmatprep.mubr.msk.bf16.mxu0 %vm381_vm1, %v2103_v8  ;;  %2048 = vmatpush3.bf16.msra.mxu0 %v2252_v23  ;;  %2953 = vst [vmem:[#allocation4_spill] sm:$0xff] %v2279_v26 }
  0x26   : > { %2049 = vmatprep.subr.bf16.mxu0 %v2261_v24  ;;  %2019 = vmatprep.subr.bf16.mxu1 %v2270_v25 }
  0x28   : > { %2020 = vmatpush3.bf16.msra.mxu1 %v2270_v25 }
  0x29   : > { %2050 = vmatpush3.bf16.msra.mxu0 %v2261_v24  ;;  %2021 = vmatprep.subr.bf16.mxu1 %v2279_v26 }
  0x2a   : > { %2051 = vmatprep.subr.bf16.mxu0 %v2270_v25 }
  0x2c   : > { %1988 = vmatmul.mubr.msk.bf16.gmra.mrb[12].mxu0 %vm381_vm1, %v2104_v9  ;;  %2022 = vmatpush3.bf16.msra.mxu1 %v2279_v26 }
  0x2d   : > { %1991 = vmatprep.mubr.msk.bf16.mxu0 %vm381_vm1, %v2105_v10  ;;  %2052 = vmatpush3.bf16.msra.mxu0 %v2270_v25 }
  0x2e   : > { %2053 = vmatprep.subr.bf16.mxu0 %v2279_v26  ;;  %2071 = vmatprep.subr.bf16.mxu1 %v2216_v18 }
  0x31   : > { %2054 = vmatpush3.bf16.msra.mxu0 %v2279_v26 }
  0x34   : > { %1992 = vmatmul.mubr.msk.bf16.gmra.mrb[16].mxu0 %vm381_vm1, %v2106_v11 }
  0x35   : > { %1995 = vmatprep.mubr.msk.bf16.mxu0 %vm381_vm1, %v2107_v12 }
  0x3c   : > { %1996 = vmatmul.mubr.msk.bf16.gmra.mrb[20].mxu0 %vm381_vm1, %v2108_v13 }
  0x3d   : > { %1999 = vmatprep.mubr.msk.bf16.mxu0 %vm381_vm1, %v2109_v14 }
  0x44   : > { %2000 = vmatmul.mubr.msk.bf16.gmra.mrb[24].mxu0 %vm381_vm1, %v2110_v15 }
  0x45   : > { %2003 = vmatprep.mubr.msk.bf16.mxu0 %vm381_vm1, %v2111_v16 }
  0x4c   : > { %2004 = vmatmul.mubr.msk.bf16.gmra.mrb[28].mxu0 %vm381_vm1, %v2112_v17 }
  0xe7   : > { %v1977_v45 = vpop.f32.mrb[0].mxu0 }
  0xe8   : > { %597 = vst [vmem:[#allocation2 + $0x48] sm:$0xff] %v1977_v45  ;;  %v468_v46 = vpop.f32.mrb[1].mxu0  ;;  %v2312_v0 = vmul.f32 %v1977_v45, %v2302_v57  ;;  %v2315_v1 = vmul.f32 %v1977_v45, %v2300_v56  ;;  %v706_v2 = vmul.f32 %v1977_v45, %v2291_v36 }
  0xe9   : > { %595 = vst [vmem:[#allocation2 + $0x28] sm:$0xff] %v468_v46  ;;  %v1978_v50 = vpop.f32.mrb[2].mxu0  ;;  %v858_v63 = vmul.f32 %v2300_v56, %v468_v46  ;;  %v704_v7 = vmul.f32 %v2291_v36, %v468_v46 }
  0xea   : > { %598 = vst [vmem:[#allocation2 + $0x50] sm:$0xff] %v1978_v50  ;;  %v471_v55 = vpop.f32.mrb[3].mxu0  ;;  %v2326_v6 = vmul.f32 %v1978_v50, %v2302_v57  ;;  %v2330_v8 = vmul.f32 %v1978_v50, %v2300_v56  ;;  %v707_v9 = vmul.f32 %v1978_v50, %v2291_v36 }
  0xeb   : > { %596 = vst [vmem:[#allocation2 + $0x30] sm:$0xff] %v471_v55  ;;  %v859_v12 = vmul.f32 %v2300_v56, %v471_v55  ;;  %v705_v14 = vmul.f32 %v2291_v36, %v471_v55 }
  0xef   : > { %v2318_v3 = vpop.f32.mrb[4].mxu0  ;;  %v943_v5 = vld [vmem:[#allocation2 + $0x47] sm:$0xff] }
  0xf0   : > { %601 = vst [vmem:[#allocation2 + $0x88] sm:$0xff] %v2318_v3  ;;  %v2334_v10 = vpop.f32.mrb[5].mxu0  ;;  %v786_v11 = vld [vmem:[#allocation2 + $0x27] sm:$0xff]  ;;  %v963_v13 = vmul.f32 %v2306_v59, %v943_v5  ;;  %v808_v15 = vmul.f32 %v943_v5, %v2304_v58  ;;  %v670_v30 = vmul.f32 %v943_v5, %v2289_v32  ;;  %v2348_v31 = vmul.f32 %v2318_v3, %v2302_v57 }
  0xf1   : > { %599 = vst [vmem:[#allocation2 + $0x68] sm:$0xff] %v2334_v10  ;;  %v2341_v16 = vpop.f32.mrb[6].mxu0  ;;  %v806_v17 = vmul.f32 %v2304_v58, %v786_v11  ;;  %v944_v19 = vld [vmem:[#allocation2 + $0x4f] sm:$0xff]  ;;  %v668_v29 = vmul.f32 %v786_v11, %v2289_v32  ;;  %v2359_v41 = vmul.f32 %v2302_v57, %v2334_v10  ;;  %v2363_v42 = vmul.f32 %v2300_v56, %v2334_v10 }
  0xf2   : > { %v1047_v27 = vld [vmem:[#allocation2 + $0x49] sm:$0xff]  ;;  %v1048_v28 = vld [vmem:[#allocation2 + $0x51] sm:$0xff]  ;;  %602 = vst [vmem:[#allocation2 + $0x90] sm:$0xff] %v2341_v16  ;;  %v2351_v33 = vpop.f32.mrb[7].mxu0  ;;  %v964_v38 = vmul.f32 %v2306_v59, %v944_v19  ;;  %v809_v46 = vmul.f32 %v944_v19, %v2304_v58  ;;  %v671_v11 = vmul.f32 %v944_v19, %v2289_v32 }
  0xf3   : > { %v787_v34 = vld [vmem:[#allocation2 + $0x2f] sm:$0xff]  ;;  %v2355_v39 = vmul.f32 %v2323_v4, %v1047_v27  ;;  %600 = vst [vmem:[#allocation2 + $0x70] sm:$0xff] %v2351_v33  ;;  %v822_v44 = vadd.f32 %v806_v17, %v770_v60  ;;  %v1068_v45 = vmul.f32 %v2323_v4, %v1048_v28  ;;  %v720_v49 = vadd.f32 %v704_v7, %v668_v29 }
  0xf4   : > { %v890_v35 = vld [vmem:[#allocation2 + $0x29] sm:$0xff]  ;;  %v891_v37 = vld [vmem:[#allocation2 + $0x31] sm:$0xff]  ;;  %v807_v43 = vmul.f32 %v2304_v58, %v787_v34  ;;  %v669_v48 = vmul.f32 %v787_v34, %v2289_v32  ;;  %v912_v60 = vmul.f32 %v1047_v27, %v2308_v62  ;;  %v722_v34 = vadd.f32 %v706_v2, %v670_v30 }
  0xf5   : > { %v910_v47 = vmul.f32 %v2308_v62, %v890_v35  ;;  %v756_v50 = vmul.f32 %v890_v35, %v2296_v40  ;;  %v874_v52 = vadd.f32 %v858_v63, %v822_v44  ;;  %v911_v53 = vmul.f32 %v2308_v62, %v891_v37 }
  0xf6   : > { %v823_v51 = vadd.f32 %v807_v43, %v771_v61  ;;  %v757_v54 = vmul.f32 %v891_v37, %v2296_v40  ;;  %v721_v55 = vadd.f32 %v705_v14, %v669_v48  ;;  %v758_v7 = vmul.f32 %v1047_v27, %v2296_v40 }
  0xf7   : > { %v772_v5 = vadd.f32 %v756_v50, %v720_v49  ;;  %v2376_v17 = vpop.f32.mrb[8].mxu0  ;;  %v926_v25 = vadd.f32 %v910_v47, %v874_v52  ;;  %v913_v14 = vmul.f32 %v1048_v28, %v2308_v62  ;;  %v723_v37 = vadd.f32 %v707_v9, %v671_v11 }
  0xf8   : > { %v875_v26 = vadd.f32 %v859_v12, %v823_v51  ;;  %605 = vst [vmem:[#allocation2 + $0xc8] sm:$0xff] %v2376_v17  ;;  %v2380_v61 = vpop.f32.mrb[9].mxu0  ;;  %v773_v63 = vadd.f32 %v757_v54, %v721_v55  ;;  %v2383_v35 = vld [vmem:[#allocation2 + $0x67] sm:$0xff]  ;;  %v1018_v2 = vmul.f32 %v2302_v57, %v2351_v33  ;;  %v759_v27 = vmul.f32 %v1048_v28, %v2296_v40 }
  0xf9   : > { %v824_v29 = vadd.f32 %v808_v15, %v772_v5  ;;  %603 = vst [vmem:[#allocation2 + $0xa8] sm:$0xff] %v2380_v61  ;;  %v2386_v19 = vpop.f32.mrb[10].mxu0  ;;  %v979_v43 = vadd.f32 %v963_v13, %v926_v25  ;;  %v965_v9 = vmul.f32 %v2306_v59, %v2383_v35  ;;  %v810_v25 = vmul.f32 %v2383_v35, %v2304_v58 }
  0xfa   : > { %v927_v12 = vadd.f32 %v911_v53, %v875_v26  ;;  %606 = vst [vmem:[#allocation2 + $0xd0] sm:$0xff] %v2386_v19  ;;  %v2392_v30 = vpop.f32.mrb[11].mxu0  ;;  %v825_v15 = vadd.f32 %v809_v46, %v773_v63  ;;  %v946_v47 = vld [vmem:[#allocation2 + $0x6f] sm:$0xff]  ;;  %v774_v28 = vadd.f32 %v758_v7, %v722_v34  ;;  %v775_v50 = vadd.f32 %v759_v27, %v723_v37 }
  0xfb   : > { %v876_v44 = vadd.f32 %v2315_v1, %v824_v29  ;;  %v1049_v48 = vld [vmem:[#allocation2 + $0x69] sm:$0xff]  ;;  %v2397_v49 = vld [vmem:[#allocation2 + $0x71] sm:$0xff]  ;;  %604 = vst [vmem:[#allocation2 + $0xb0] sm:$0xff] %v2392_v30  ;;  %v1031_v13 = vadd.f32 %v2312_v0, %v979_v43  ;;  %v966_v51 = vmul.f32 %v2306_v59, %v946_v47  ;;  %v811_v52 = vmul.f32 %v946_v47, %v2304_v58 }
  0xfc   : > { %v980_v26 = vadd.f32 %v964_v38, %v927_v12  ;;  %v877_v46 = vadd.f32 %v2330_v8, %v825_v15  ;;  %v1069_v54 = vmul.f32 %v2323_v4, %v1049_v48  ;;  %v1070_v55 = vmul.f32 %v2323_v4, %v2397_v49  ;;  %v2412_v8 = vld [vmem:[#allocation2 + $0x87] sm:$0xff] }
  0xfd   : > { %v928_v1 = vadd.f32 %v912_v60, %v876_v44  ;;  %v826_v5 = vadd.f32 %v810_v25, %v774_v28  ;;  %v827_v0 = vadd.f32 %v811_v52, %v775_v50  ;;  %v863_v34 = vmul.f32 %v2300_v56, %v2351_v33  ;;  %v2414_v60 = vld [vmem:[#allocation2 + $0x8f] sm:$0xff] }
  0xfe   : > { %v1032_v53 = vadd.f32 %v2326_v6, %v980_v26  ;;  %v929_v38 = vadd.f32 %v913_v14, %v877_v46  ;;  %v1083_v6 = vadd.f32 %v2355_v39, %v1031_v13  ;;  %v914_v37 = vmul.f32 %v1049_v48, %v2308_v62  ;;  %v1051_v50 = vld [vmem:[#allocation2 + $0x89] sm:$0xff]  ;;  %v1052_v46 = vld [vmem:[#allocation2 + $0x91] sm:$0xff] }
  0xff   : > { %v981_v11 = vadd.f32 %v965_v9, %v928_v1  ;;  %v2416_v7 = vpop.f32.mrb[12].mxu0  ;;  %v878_v29 = vadd.f32 %v2363_v42, %v826_v5  ;;  %v879_v27 = vadd.f32 %v863_v34, %v827_v0  ;;  %v915_v15 = vmul.f32 %v2397_v49, %v2308_v62 }
 0x100   : > { %v1084_v63 = vadd.f32 %v1068_v45, %v1032_v53  ;;  %609 = vst [vmem:[#allocation2 + $0x108] sm:$0xff] %v2416_v7  ;;  %v2422_v14 = vpop.f32.mrb[13].mxu0  ;;  %v982_v12 = vadd.f32 %v966_v51, %v929_v38  ;;  %v967_v42 = vmul.f32 %v2306_v59, %v2412_v8  ;;  %v968_v9 = vmul.f32 %v2306_v59, %v2414_v60 }
 0x101   : > { %v1033_v43 = vadd.f32 %v2359_v41, %v981_v11  ;;  %607 = vst [vmem:[#allocation2 + $0xe8] sm:$0xff] %v2422_v14  ;;  %v2428_v44 = vpop.f32.mrb[14].mxu0  ;;  %v930_v45 = vadd.f32 %v914_v37, %v878_v29  ;;  %v931_v13 = vadd.f32 %v915_v15, %v879_v27  ;;  %v1020_v28 = vmul.f32 %v2341_v16, %v2302_v57 }
 0x102   : > { %v1099_v39 = vpack.c.bf16 %v1084_v63, %v1083_v6  ;;  %610 = vst [vmem:[#allocation2 + $0x110] sm:$0xff] %v2428_v44  ;;  %v2435_v25 = vpop.f32.mrb[15].mxu0  ;;  %v1034_v41 = vadd.f32 %v1018_v2, %v982_v12  ;;  %v672_v51 = vmul.f32 %v2383_v35, %v2289_v32  ;;  %v673_v52 = vmul.f32 %v946_v47, %v2289_v32 }
 0x103   : > { %v1085_v26 = vadd.f32 %v1069_v54, %v1033_v43  ;;  %608 = vst [vmem:[#allocation2 + $0xf0] sm:$0xff] %v2435_v25  ;;  %v983_v1 = vadd.f32 %v967_v42, %v930_v45  ;;  %v708_v53 = vmul.f32 %v2291_v36, %v2334_v10  ;;  %v984_v54 = vadd.f32 %v968_v9, %v931_v13 }
 0x104   : > { %2023 = vmatprep.mubr.bf16.mxu1 %v1099_v39  ;;  %v1086_v2 = vadd.f32 %v1070_v55, %v1034_v41  ;;  %v709_v5 = vmul.f32 %v2291_v36, %v2351_v33  ;;  %v760_v38 = vmul.f32 %v1049_v48, %v2296_v40  ;;  %v1071_v0 = vmul.f32 %v2323_v4, %v1051_v50  ;;  %v2457_v48 = vld [vmem:[#allocation2 + $0xa7] sm:$0xff] }
 0x105   : > { %v1035_v11 = vadd.f32 %v2348_v31, %v983_v1  ;;  %v1072_v34 = vmul.f32 %v2323_v4, %v1052_v46  ;;  %v724_v6 = vadd.f32 %v708_v53, %v672_v51  ;;  %v1036_v63 = vadd.f32 %v1020_v28, %v984_v54  ;;  %v1053_v54 = vld [vmem:[#allocation2 + $0xa9] sm:$0xff] }
 0x106   : > { %v1100_v35 = vpack.c.bf16 %v1086_v2, %v1085_v26  ;;  %v725_v47 = vadd.f32 %v709_v5, %v673_v52  ;;  %v761_v10 = vmul.f32 %v2397_v49, %v2296_v40  ;;  %v812_v33 = vmul.f32 %v2412_v8, %v2304_v58  ;;  %v2464_v49 = vld [vmem:[#allocation2 + $0xaf] sm:$0xff] }
 0x107   : > { %v2453_v55 = vpop.f32.mrb[16].mxu0  ;;  %v776_v29 = vadd.f32 %v760_v38, %v724_v6  ;;  %v1087_v37 = vadd.f32 %v1071_v0, %v1035_v11  ;;  %v1088_v12 = vadd.f32 %v1072_v34, %v1036_v63  ;;  %v813_v27 = vmul.f32 %v2414_v60, %v2304_v58  ;;  %v2489_v5 = vld [vmem:[#allocation2 + $0xb1] sm:$0xff] }
 0x108   : > { %613 = vst [vmem:[#allocation2 + $0x148] sm:$0xff] %v2453_v55  ;;  %2024 = vmatmul.mubr.bf16.vlgmr.msra.gmra.mrb[0].mxu1 %v1100_v35  ;;  %v2460_v31 = vpop.f32.mrb[17].mxu0  ;;  %v777_v43 = vadd.f32 %v761_v10, %v725_v47  ;;  %v864_v45 = vmul.f32 %v2318_v3, %v2300_v56  ;;  %v865_v42 = vmul.f32 %v2341_v16, %v2300_v56 }
 0x109   : > { %611 = vst [vmem:[#allocation2 + $0x128] sm:$0xff] %v2460_v31  ;;  %v2467_v15 = vpop.f32.mrb[18].mxu0  ;;  %v828_v39 = vadd.f32 %v812_v33, %v776_v29  ;;  %v916_v9 = vmul.f32 %v1051_v50, %v2308_v62  ;;  %2079 = vmatpush3.bf16.msra.mxu1 %v2216_v18  ;;  %v1101_v26 = vpack.c.bf16 %v1088_v12, %v1087_v37 }
 0x10a   : > { %614 = vst [vmem:[#allocation2 + $0x150] sm:$0xff] %v2467_v15  ;;  %v2476_v41 = vpop.f32.mrb[19].mxu0  ;;  %v829_v13 = vadd.f32 %v813_v27, %v777_v43  ;;  %v917_v28 = vmul.f32 %v1052_v46, %v2308_v62  ;;  %v969_v1 = vmul.f32 %v2306_v59, %v2457_v48  ;;  %2072 = vmatprep.subr.bf16.mxu1 %v2225_v20 }
 0x10b   : > { %612 = vst [vmem:[#allocation2 + $0x130] sm:$0xff] %v2476_v41  ;;  %v880_v51 = vadd.f32 %v864_v45, %v828_v39  ;;  %v970_v52 = vmul.f32 %v2306_v59, %v2464_v49  ;;  %v674_v18 = vmul.f32 %v2412_v8, %v2289_v32  ;;  %v675_v53 = vmul.f32 %v2414_v60, %v2289_v32  ;;  %v2519_v39 = vld [vmem:[#allocation2 + $0xcf] sm:$0xff] }
 0x10c   : > { %2027 = vmatprep.mubr.bf16.mxu1 %v1101_v26  ;;  %v881_v2 = vadd.f32 %v865_v42, %v829_v13  ;;  %v710_v38 = vmul.f32 %v2318_v3, %v2291_v36  ;;  %v711_v11 = vmul.f32 %v2341_v16, %v2291_v36  ;;  %v762_v0 = vmul.f32 %v1051_v50, %v2296_v40 }
 0x10d   : > { %v932_v34 = vadd.f32 %v916_v9, %v880_v51  ;;  %v1021_v8 = vmul.f32 %v2302_v57, %v2380_v61  ;;  %v763_v6 = vmul.f32 %v1052_v46, %v2296_v40  ;;  %v814_v60 = vmul.f32 %v2457_v48, %v2304_v58  ;;  %2080 = vmatpush3.bf16.msra.mxu1 %v2225_v20  ;;  %v2512_v20 = vld [vmem:[#allocation2 + $0xc7] sm:$0xff] }
 0x10e   : > { %v933_v35 = vadd.f32 %v917_v28, %v881_v2  ;;  %v726_v63 = vadd.f32 %v710_v38, %v674_v18  ;;  %v727_v47 = vadd.f32 %v711_v11, %v675_v53  ;;  %v815_v3 = vmul.f32 %v2464_v49, %v2304_v58  ;;  %2073 = vmatprep.subr.bf16.mxu1 %v2234_v21 }
 0x10f   : > { %v2505_v16 = vpop.f32.mrb[20].mxu0  ;;  %v985_v50 = vadd.f32 %v969_v1, %v932_v34  ;;  %v1022_v10 = vmul.f32 %v2302_v57, %v2392_v30  ;;  %v1073_v46 = vmul.f32 %v2323_v4, %v1053_v54  ;;  %v1074_v29 = vmul.f32 %v2323_v4, %v2489_v5 }
 0x110   : > { %617 = vst [vmem:[#allocation2 + $0x188] sm:$0xff] %v2505_v16  ;;  %v986_v33 = vadd.f32 %v970_v52, %v933_v35  ;;  %v2515_v37 = vpop.f32.mrb[21].mxu0  ;;  %v778_v12 = vadd.f32 %v762_v0, %v726_v63  ;;  %v779_v43 = vadd.f32 %v763_v6, %v727_v47  ;;  %v866_v27 = vmul.f32 %v2300_v56, %v2380_v61  ;;  %v1056_v6 = vld [vmem:[#allocation2 + $0xd1] sm:$0xff] }
 0x111   : > { %v1037_v45 = vadd.f32 %v1021_v8, %v985_v50  ;;  %615 = vst [vmem:[#allocation2 + $0x168] sm:$0xff] %v2515_v37  ;;  %v2522_v42 = vpop.f32.mrb[22].mxu0  ;;  %v867_v9 = vmul.f32 %v2300_v56, %v2392_v30  ;;  %v918_v26 = vmul.f32 %v1053_v54, %v2308_v62  ;;  %v919_v13 = vmul.f32 %v2489_v5, %v2308_v62  ;;  %v1055_v8 = vld [vmem:[#allocation2 + $0xc9] sm:$0xff] }
 0x112   : > { %2081 = vmatpush3.bf16.msra.mxu1 %v2234_v21  ;;  %v1038_v28 = vadd.f32 %v1022_v10, %v986_v33  ;;  %618 = vst [vmem:[#allocation2 + $0x190] sm:$0xff] %v2522_v42  ;;  %v2531_v1 = vpop.f32.mrb[23].mxu0  ;;  %v830_v51 = vadd.f32 %v814_v60, %v778_v12  ;;  %v831_v52 = vadd.f32 %v815_v3, %v779_v43 }
 0x113   : > { %v971_v18 = vmul.f32 %v2306_v59, %v2512_v20  ;;  %2074 = vmatprep.subr.bf16.mxu1 %v2243_v22  ;;  %v1089_v53 = vadd.f32 %v1073_v46, %v1037_v45  ;;  %616 = vst [vmem:[#allocation2 + $0x170] sm:$0xff] %v2531_v1  ;;  %v972_v2 = vmul.f32 %v2306_v59, %v2519_v39  ;;  %v2565_v45 = vld [vmem:[#allocation2 + $0xef] sm:$0xff] }
 0x114   : > { %v676_v21 = vmul.f32 %v2457_v48, %v2289_v32  ;;  %v677_v38 = vmul.f32 %v2464_v49, %v2289_v32  ;;  %v1090_v11 = vadd.f32 %v1074_v29, %v1038_v28  ;;  %v882_v0 = vadd.f32 %v866_v27, %v830_v51  ;;  %v2563_v27 = vld [vmem:[#allocation2 + $0xe7] sm:$0xff] }
 0x115   : > { %v883_v34 = vadd.f32 %v867_v9, %v831_v52  ;;  %v712_v60 = vmul.f32 %v2291_v36, %v2380_v61  ;;  %v1023_v35 = vmul.f32 %v2376_v17, %v2302_v57  ;;  %v1024_v63 = vmul.f32 %v2386_v19, %v2302_v57 }
 0x116   : > { %v713_v48 = vmul.f32 %v2291_v36, %v2392_v30  ;;  %v764_v47 = vmul.f32 %v1053_v54, %v2296_v40  ;;  %2082 = vmatpush3.bf16.msra.mxu1 %v2243_v22  ;;  %v1102_v49 = vpack.c.bf16 %v1090_v11, %v1089_v53  ;;  %v934_v3 = vadd.f32 %v918_v26, %v882_v0 }
 0x117   : > { %v935_v50 = vadd.f32 %v919_v13, %v883_v34  ;;  %v728_v10 = vadd.f32 %v712_v60, %v676_v21  ;;  %2075 = vmatprep.subr.bf16.mxu1 %v2252_v23  ;;  %v1075_v61 = vmul.f32 %v2323_v4, %v1055_v8  ;;  %v1076_v46 = vmul.f32 %v2323_v4, %v1056_v6  ;;  %v2556_v29 = vpop.f32.mrb[24].mxu0 }
 0x118   : > { %v729_v33 = vadd.f32 %v713_v48, %v677_v38  ;;  %v765_v30 = vmul.f32 %v2489_v5, %v2296_v40  ;;  %2028 = vmatmul.mubr.bf16.gmra.mrb[4].mxu1 %v1102_v49  ;;  %v987_v54 = vadd.f32 %v971_v18, %v934_v3  ;;  %621 = vst [vmem:[#allocation2 + $0x1c8] sm:$0xff] %v2556_v29  ;;  %v2567_v9 = vpop.f32.mrb[25].mxu0 }
 0x119   : > { %v988_v12 = vadd.f32 %v972_v2, %v935_v50  ;;  %v780_v22 = vadd.f32 %v764_v47, %v728_v10  ;;  %v816_v43 = vmul.f32 %v2512_v20, %v2304_v58  ;;  %v817_v13 = vmul.f32 %v2519_v39, %v2304_v58  ;;  %619 = vst [vmem:[#allocation2 + $0x1a8] sm:$0xff] %v2567_v9  ;;  %v2576_v51 = vpop.f32.mrb[26].mxu0 }
 0x11a   : > { %v781_v26 = vadd.f32 %v765_v30, %v729_v33  ;;  %v868_v5 = vmul.f32 %v2376_v17, %v2300_v56  ;;  %v869_v28 = vmul.f32 %v2386_v19, %v2300_v56  ;;  %2083 = vmatpush3.bf16.msra.mxu1 %v2252_v23  ;;  %v1039_v52 = vadd.f32 %v1023_v35, %v987_v54  ;;  %v2581_v21 = vpop.f32.mrb[27].mxu0  ;;  %v1058_v54 = vld [vmem:[#allocation2 + $0xf1] sm:$0xff] }
 0x11b   : > { %v1040_v18 = vadd.f32 %v1024_v63, %v988_v12  ;;  %v832_v53 = vadd.f32 %v816_v43, %v780_v22  ;;  %v920_v2 = vmul.f32 %v1055_v8, %v2308_v62  ;;  %622 = vst [vmem:[#allocation2 + $0x1d0] sm:$0xff] %v2576_v51  ;;  %2076 = vmatprep.subr.bf16.mxu1 %v2261_v24  ;;  %620 = vst [vmem:[#allocation2 + $0x1b0] sm:$0xff] %v2581_v21 }
 0x11c   : > { %v833_v38 = vadd.f32 %v817_v13, %v781_v26  ;;  %v921_v11 = vmul.f32 %v1056_v6, %v2308_v62  ;;  %v973_v0 = vmul.f32 %v2306_v59, %v2563_v27  ;;  %v974_v23 = vmul.f32 %v2306_v59, %v2565_v45 }
 0x11d   : > { %v1091_v34 = vadd.f32 %v1075_v61, %v1039_v52  ;;  %v1092_v60 = vadd.f32 %v1076_v46, %v1040_v18  ;;  %v884_v35 = vadd.f32 %v868_v5, %v832_v53  ;;  %v678_v63 = vmul.f32 %v2512_v20, %v2289_v32  ;;  %v1057_v61 = vld [vmem:[#allocation2 + $0xe9] sm:$0xff]  ;;  %v2954_v20 = vld [vmem:[#allocation3_spill] sm:$0xff] }
 0x11e   : > { %v885_v48 = vadd.f32 %v869_v28, %v833_v38  ;;  %v679_v47 = vmul.f32 %v2519_v39, %v2289_v32  ;;  %v714_v49 = vmul.f32 %v2376_v17, %v2291_v36  ;;  %v715_v3 = vmul.f32 %v2386_v19, %v2291_v36  ;;  %2084 = vmatpush3.bf16.msra.mxu1 %v2261_v24  ;;  %v2616_v52 = vld [vmem:[#allocation2 + $0x107] sm:$0xff]  ;;  %v2618_v18 = vld [vmem:[#allocation2 + $0x10f] sm:$0xff] }
 0x11f   : > { %v1103_v50 = vpack.c.bf16 %v1092_v60, %v1091_v34  ;;  %v936_v10 = vadd.f32 %v920_v2, %v884_v35  ;;  %v766_v46 = vmul.f32 %v1055_v8, %v2296_v40  ;;  %v767_v33 = vmul.f32 %v1056_v6, %v2296_v40  ;;  %2077 = vmatprep.subr.bf16.mxu1 %v2954_v20  ;;  %v2604_v22 = vpop.f32.mrb[28].mxu0  ;;  %v2955_v34 = vld [vmem:[#allocation4_spill] sm:$0xff] }
 0x120   : > { %v937_v30 = vadd.f32 %v921_v11, %v885_v48  ;;  %v730_v39 = vadd.f32 %v714_v49, %v678_v63  ;;  %v731_v12 = vadd.f32 %v715_v3, %v679_v47  ;;  %v818_v17 = vmul.f32 %v2563_v27, %v2304_v58  ;;  %625 = vst [vmem:[#allocation2 + $0x208] sm:$0xff] %v2604_v22  ;;  %v2613_v43 = vpop.f32.mrb[29].mxu0 }
 0x121   : > { %2031 = vmatprep.mubr.bf16.mxu1 %v1103_v50  ;;  %v989_v24 = vadd.f32 %v973_v0, %v936_v10  ;;  %v1025_v19 = vmul.f32 %v2302_v57, %v2422_v14  ;;  %v1026_v8 = vmul.f32 %v2302_v57, %v2435_v25  ;;  %v819_v6 = vmul.f32 %v2565_v45, %v2304_v58  ;;  %v2621_v53 = vpop.f32.mrb[30].mxu0 }
 0x122   : > { %v990_v26 = vadd.f32 %v974_v23, %v937_v30  ;;  %v1077_v13 = vmul.f32 %v2323_v4, %v1057_v61  ;;  %v782_v5 = vadd.f32 %v766_v46, %v730_v39  ;;  %v783_v28 = vadd.f32 %v767_v33, %v731_v12  ;;  %623 = vst [vmem:[#allocation2 + $0x1e8] sm:$0xff] %v2613_v43  ;;  %v2630_v23 = vpop.f32.mrb[31].mxu0  ;;  %v1059_v30 = vld [vmem:[#allocation2 + $0x109] sm:$0xff]  ;;  %v1060_v39 = vld [vmem:[#allocation2 + $0x111] sm:$0xff] }
 0x123   : > { %2085 = vmatpush3.bf16.msra.mxu1 %v2954_v20  ;;  %v1041_v2 = vadd.f32 %v1025_v19, %v989_v24  ;;  %v1078_v38 = vmul.f32 %v2323_v4, %v1058_v54  ;;  %v870_v11 = vmul.f32 %v2300_v56, %v2422_v14  ;;  %v871_v0 = vmul.f32 %v2300_v56, %v2435_v25 }
 0x124   : > { %626 = vst [vmem:[#allocation2 + $0x210] sm:$0xff] %v2621_v53  ;;  %2078 = vmatprep.subr.bf16.mxu1 %v2955_v34  ;;  %v1042_v60 = vadd.f32 %v1026_v8, %v990_v26  ;;  %v834_v35 = vadd.f32 %v818_v17, %v782_v5  ;;  %v835_v63 = vadd.f32 %v819_v6, %v783_v28  ;;  %624 = vst [vmem:[#allocation2 + $0x1f0] sm:$0xff] %v2630_v23 }
 0x125   : > { %v922_v48 = vmul.f32 %v1057_v61, %v2308_v62  ;;  %v1093_v47 = vadd.f32 %v1077_v13, %v1041_v2  ;;  %v923_v49 = vmul.f32 %v1058_v54, %v2308_v62  ;;  %v975_v3 = vmul.f32 %v2306_v59, %v2616_v52  ;;  %v852_v2 = vld [vmem:[#allocation2 + $0x108] sm:$0xff] }
 0x126   : > { %v976_v50 = vmul.f32 %v2306_v59, %v2618_v18  ;;  %v1094_v10 = vadd.f32 %v1078_v38, %v1042_v60  ;;  %v886_v46 = vadd.f32 %v870_v11, %v834_v35  ;;  %v887_v33 = vadd.f32 %v871_v0, %v835_v63  ;;  %v957_v60 = vld [vmem:[#allocation2 + $0x127] sm:$0xff]  ;;  %v958_v35 = vld [vmem:[#allocation2 + $0x12f] sm:$0xff] }
 0x127   : > { %v680_v20 = vmul.f32 %v2563_v27, %v2289_v32  ;;  %2086 = vmatpush3.bf16.msra.mxu1 %v2955_v34  ;;  %v681_v12 = vmul.f32 %v2565_v45, %v2289_v32  ;;  %v716_v17 = vmul.f32 %v2291_v36, %v2422_v14  ;;  %v717_v24 = vmul.f32 %v2291_v36, %v2435_v25  ;;  %v853_v14 = vld [vmem:[#allocation2 + $0x110] sm:$0xff] }
 0x128   : > { %v768_v19 = vmul.f32 %v1057_v61, %v2296_v40  ;;  %v1104_v8 = vpack.c.bf16 %v1094_v10, %v1093_v47  ;;  %v938_v6 = vadd.f32 %v922_v48, %v886_v46  ;;  %v939_v26 = vadd.f32 %v923_v49, %v887_v33 }
 0x129   : > { %v1027_v27 = vmul.f32 %v2416_v7, %v2302_v57  ;;  %v1028_v13 = vmul.f32 %v2428_v44, %v2302_v57  ;;  %v732_v5 = vadd.f32 %v716_v17, %v680_v20  ;;  %v733_v28 = vadd.f32 %v717_v24, %v681_v12 }
 0x12a   : > { %v769_v45 = vmul.f32 %v1058_v54, %v2296_v40  ;;  %2032 = vmatmul.mubr.bf16.gmra.mrb[8].mxu1 %v1104_v8  ;;  %v991_v38 = vadd.f32 %v975_v3, %v938_v6  ;;  %v992_v25 = vadd.f32 %v976_v50, %v939_v26  ;;  %v1079_v61 = vmul.f32 %v2323_v4, %v1059_v30  ;;  %v1061_v26 = vld [vmem:[#allocation2 + $0x129] sm:$0xff] }
 0x12b   : > { %v1080_v11 = vmul.f32 %v2323_v4, %v1060_v39  ;;  %v784_v0 = vadd.f32 %v768_v19, %v732_v5  ;;  %v820_v7 = vmul.f32 %v2616_v52, %v2304_v58  ;;  %v821_v44 = vmul.f32 %v2618_v18, %v2304_v58 }
 0x12c   : > { %v785_v34 = vadd.f32 %v769_v45, %v733_v28  ;;  %v1043_v54 = vadd.f32 %v1027_v27, %v991_v38  ;;  %v1044_v63 = vadd.f32 %v1028_v13, %v992_v25  ;;  %v872_v48 = vmul.f32 %v2300_v56, %v852_v2  ;;  %v1062_v25 = vld [vmem:[#allocation2 + $0x131] sm:$0xff] }
 0x12d   : > { %v873_v47 = vmul.f32 %v2300_v56, %v853_v14  ;;  %v836_v49 = vadd.f32 %v820_v7, %v784_v0  ;;  %v924_v50 = vmul.f32 %v1059_v30, %v2308_v62  ;;  %v925_v10 = vmul.f32 %v1060_v39, %v2308_v62  ;;  %v1549_v7 = vld [vmem:[#allocation2 + $0x147] sm:$0xff] }
 0x12e   : > { %v837_v3 = vadd.f32 %v821_v44, %v785_v34  ;;  %v1095_v46 = vadd.f32 %v1079_v61, %v1043_v54  ;;  %v1096_v33 = vadd.f32 %v1080_v11, %v1044_v63  ;;  %v977_v20 = vmul.f32 %v2306_v59, %v957_v60 }
 0x12f   : > { %v978_v12 = vmul.f32 %v2306_v59, %v958_v35  ;;  %v888_v17 = vadd.f32 %v872_v48, %v836_v49  ;;  %v1291_v19 = vmul.f32 %v2616_v52, %v2289_v32  ;;  %v1292_v8 = vmul.f32 %v2618_v18, %v2289_v32  ;;  %v1550_v48 = vld [vmem:[#allocation2 + $0x14f] sm:$0xff] }
 0x130   : > { %v889_v24 = vadd.f32 %v873_v47, %v837_v3  ;;  %v1105_v6 = vpack.c.bf16 %v1096_v33, %v1095_v46  ;;  %v1323_v27 = vmul.f32 %v852_v2, %v2291_v36  ;;  %v1324_v13 = vmul.f32 %v853_v14, %v2291_v36 }
 0x131   : > { %v1371_v5 = vmul.f32 %v1059_v30, %v2296_v40  ;;  %v940_v28 = vadd.f32 %v924_v50, %v888_v17  ;;  %v1029_v38 = vmul.f32 %v2302_v57, %v2460_v31  ;;  %v1372_v61 = vmul.f32 %v1060_v39, %v2296_v40 }
 0x132   : > { %v941_v45 = vadd.f32 %v925_v10, %v889_v24  ;;  %2035 = vmatprep.mubr.bf16.mxu1 %v1105_v6  ;;  %v1339_v52 = vadd.f32 %v1323_v27, %v1291_v19  ;;  %v1340_v11 = vadd.f32 %v1324_v13, %v1292_v8  ;;  %v1420_v18 = vmul.f32 %v957_v60, %v2304_v58  ;;  %v1645_v27 = vld [vmem:[#allocation2 + $0x149] sm:$0xff]  ;;  %v1646_v13 = vld [vmem:[#allocation2 + $0x151] sm:$0xff] }
 0x133   : > { %v1421_v0 = vmul.f32 %v958_v35, %v2304_v58  ;;  %v993_v2 = vadd.f32 %v977_v20, %v940_v28  ;;  %v1030_v30 = vmul.f32 %v2302_v57, %v2476_v41  ;;  %v1081_v14 = vmul.f32 %v2323_v4, %v1061_v26 }
 0x134   : > { %v994_v34 = vadd.f32 %v978_v12, %v941_v45  ;;  %v1082_v44 = vmul.f32 %v2323_v4, %v1062_v25  ;;  %v1387_v54 = vadd.f32 %v1371_v5, %v1339_v52  ;;  %v1388_v63 = vadd.f32 %v1372_v61, %v1340_v11 }
 0x135   : > { %v1468_v39 = vmul.f32 %v2300_v56, %v2460_v31  ;;  %v1045_v47 = vadd.f32 %v1029_v38, %v993_v2  ;;  %v1469_v3 = vmul.f32 %v2300_v56, %v2476_v41  ;;  %v1516_v50 = vmul.f32 %v1061_v26, %v2308_v62 }
 0x136   : > { %v1046_v49 = vadd.f32 %v1030_v30, %v994_v34  ;;  %v1436_v10 = vadd.f32 %v1420_v18, %v1387_v54  ;;  %v1437_v46 = vadd.f32 %v1421_v0, %v1388_v63  ;;  %v1517_v33 = vmul.f32 %v1062_v25, %v2308_v62  ;;  %v1552_v54 = vld [vmem:[#allocation2 + $0x16f] sm:$0xff] }
 0x137   : > { %v1565_v20 = vmul.f32 %v1549_v7, %v2306_v59  ;;  %v1097_v12 = vadd.f32 %v1081_v14, %v1045_v47  ;;  %v1566_v24 = vmul.f32 %v1550_v48, %v2306_v59  ;;  %v1293_v19 = vmul.f32 %v957_v60, %v2289_v32 }
 0x138   : > { %v1098_v17 = vadd.f32 %v1082_v44, %v1046_v49  ;;  %v1484_v8 = vadd.f32 %v1468_v39, %v1436_v10  ;;  %v1485_v6 = vadd.f32 %v1469_v3, %v1437_v46  ;;  %v1294_v5 = vmul.f32 %v958_v35, %v2289_v32  ;;  %v1311_v46 = vld [vmem:[#allocation2 + $0x148] sm:$0xff] }
 0x139   : > { %v1325_v28 = vmul.f32 %v2291_v36, %v2460_v31  ;;  %v1613_v38 = vmul.f32 %v2453_v55, %v2302_v57  ;;  %v1326_v61 = vmul.f32 %v2291_v36, %v2476_v41  ;;  %v1373_v52 = vmul.f32 %v1061_v26, %v2296_v40  ;;  %v1551_v26 = vld [vmem:[#allocation2 + $0x167] sm:$0xff] }
 0x13a   : > { %v1106_v45 = vpack.c.bf16 %v1098_v17, %v1097_v12  ;;  %v1532_v11 = vadd.f32 %v1516_v50, %v1484_v8  ;;  %v1533_v60 = vadd.f32 %v1517_v33, %v1485_v6  ;;  %v1614_v18 = vmul.f32 %v2467_v15, %v2302_v57 }
 0x13b   : > { %v1341_v0 = vadd.f32 %v1325_v28, %v1293_v19  ;;  %v1661_v35 = vmul.f32 %v2323_v4, %v1645_v27  ;;  %v1662_v31 = vmul.f32 %v2323_v4, %v1646_v13  ;;  %v1342_v2 = vadd.f32 %v1326_v61, %v1294_v5 }
 0x13c   : > { %2036 = vmatmul.mubr.bf16.gmra.mrb[12].mxu1 %v1106_v45  ;;  %v1374_v34 = vmul.f32 %v1062_v25, %v2296_v40  ;;  %v1581_v30 = vadd.f32 %v1565_v20, %v1532_v11  ;;  %v1582_v14 = vadd.f32 %v1566_v24, %v1533_v60  ;;  %v1422_v41 = vmul.f32 %v1549_v7, %v2304_v58 }
 0x13d   : > { %v1389_v44 = vadd.f32 %v1373_v52, %v1341_v0  ;;  %v1423_v39 = vmul.f32 %v1550_v48, %v2304_v58  ;;  %v1470_v47 = vmul.f32 %v2453_v55, %v2300_v56  ;;  %v1471_v49 = vmul.f32 %v2467_v15, %v2300_v56  ;;  %v1647_v52 = vld [vmem:[#allocation2 + $0x169] sm:$0xff]  ;;  %v1648_v0 = vld [vmem:[#allocation2 + $0x171] sm:$0xff] }
 0x13e   : > { %v1390_v63 = vadd.f32 %v1374_v34, %v1342_v2  ;;  %v1629_v3 = vadd.f32 %v1613_v38, %v1581_v30  ;;  %v1630_v50 = vadd.f32 %v1614_v18, %v1582_v14  ;;  %v1518_v25 = vmul.f32 %v1645_v27, %v2308_v62 }
 0x13f   : > { %v1438_v10 = vadd.f32 %v1422_v41, %v1389_v44  ;;  %v1519_v20 = vmul.f32 %v1646_v13, %v2308_v62  ;;  %v1567_v12 = vmul.f32 %v1551_v26, %v2306_v59  ;;  %v1568_v17 = vmul.f32 %v1552_v54, %v2306_v59  ;;  %v1553_v44 = vld [vmem:[#allocation2 + $0x187] sm:$0xff]  ;;  %v1554_v41 = vld [vmem:[#allocation2 + $0x18f] sm:$0xff] }
 0x140   : > { %v1439_v33 = vadd.f32 %v1423_v39, %v1390_v63  ;;  %v1677_v24 = vadd.f32 %v1661_v35, %v1629_v3  ;;  %v1678_v19 = vadd.f32 %v1662_v31, %v1630_v50  ;;  %v1295_v55 = vmul.f32 %v1549_v7, %v2289_v32 }
 0x141   : > { %v1486_v8 = vadd.f32 %v1470_v47, %v1438_v10  ;;  %v1296_v5 = vmul.f32 %v1550_v48, %v2289_v32  ;;  %v1327_v28 = vmul.f32 %v1311_v46, %v2291_v36  ;;  %v1328_v45 = vmul.f32 %v2467_v15, %v2291_v36 }
 0x142   : > { %v1487_v6 = vadd.f32 %v1471_v49, %v1439_v33  ;;  %v1693_v38 = vpack.c.bf16 %v1678_v19, %v1677_v24  ;;  %v1375_v11 = vmul.f32 %v1645_v27, %v2296_v40  ;;  %v1376_v60 = vmul.f32 %v1646_v13, %v2296_v40 }
 0x143   : > { %v1534_v61 = vadd.f32 %v1518_v25, %v1486_v8  ;;  %v1343_v35 = vadd.f32 %v1327_v28, %v1295_v55  ;;  %v1344_v31 = vadd.f32 %v1328_v45, %v1296_v5  ;;  %v1424_v7 = vmul.f32 %v1551_v26, %v2304_v58  ;;  %v1649_v55 = vld [vmem:[#allocation2 + $0x189] sm:$0xff] }
 0x144   : > { %v1535_v18 = vadd.f32 %v1519_v20, %v1487_v6  ;;  %2055 = vmatprep.mubr.bf16.mxu0 %v1693_v38  ;;  %v1615_v2 = vmul.f32 %v2302_v57, %v2515_v37  ;;  %v1616_v15 = vmul.f32 %v2302_v57, %v2531_v1  ;;  %v1425_v34 = vmul.f32 %v1552_v54, %v2304_v58  ;;  %v1650_v6 = vld [vmem:[#allocation2 + $0x191] sm:$0xff] }
 0x145   : > { %v1583_v48 = vadd.f32 %v1567_v12, %v1534_v61  ;;  %v1663_v27 = vmul.f32 %v2323_v4, %v1647_v52  ;;  %v1391_v13 = vadd.f32 %v1375_v11, %v1343_v35  ;;  %v1392_v14 = vadd.f32 %v1376_v60, %v1344_v31 }
 0x146   : > { %v1584_v30 = vadd.f32 %v1568_v17, %v1535_v18  ;;  %v1664_v39 = vmul.f32 %v2323_v4, %v1648_v0  ;;  %v1472_v47 = vmul.f32 %v2300_v56, %v2515_v37  ;;  %v1473_v49 = vmul.f32 %v2300_v56, %v2531_v1 }
 0x147   : > { %v1631_v63 = vadd.f32 %v1615_v2, %v1583_v48  ;;  %v1440_v50 = vadd.f32 %v1424_v7, %v1391_v13  ;;  %v1441_v10 = vadd.f32 %v1425_v34, %v1392_v14  ;;  %v1520_v25 = vmul.f32 %v1647_v52, %v2308_v62 }
 0x148   : > { %v1632_v3 = vadd.f32 %v1616_v15, %v1584_v30  ;;  %v1521_v33 = vmul.f32 %v1648_v0, %v2308_v62  ;;  %v1569_v20 = vmul.f32 %v1553_v44, %v2306_v59  ;;  %v1570_v12 = vmul.f32 %v1554_v41, %v2306_v59  ;;  %v1555_v30 = vld [vmem:[#allocation2 + $0x1a7] sm:$0xff] }
 0x149   : > { %v1679_v46 = vadd.f32 %v1663_v27, %v1631_v63  ;;  %v1488_v24 = vadd.f32 %v1472_v47, %v1440_v50  ;;  %v1489_v19 = vadd.f32 %v1473_v49, %v1441_v10  ;;  %v1297_v8 = vmul.f32 %v1551_v26, %v2289_v32  ;;  %v1556_v27 = vld [vmem:[#allocation2 + $0x1af] sm:$0xff] }
 0x14a   : > { %v1680_v17 = vadd.f32 %v1664_v39, %v1632_v3  ;;  %v1298_v5 = vmul.f32 %v1552_v54, %v2289_v32  ;;  %v1329_v28 = vmul.f32 %v2291_v36, %v2515_v37  ;;  %v1330_v45 = vmul.f32 %v2291_v36, %v2531_v1  ;;  %v1315_v3 = vld [vmem:[#allocation2 + $0x188] sm:$0xff] }
 0x14b   : > { %v1377_v38 = vmul.f32 %v1647_v52, %v2296_v40  ;;  %v1536_v11 = vadd.f32 %v1520_v25, %v1488_v24  ;;  %v1537_v60 = vadd.f32 %v1521_v33, %v1489_v19  ;;  %v1617_v18 = vmul.f32 %v2505_v16, %v2302_v57  ;;  %v1651_v24 = vld [vmem:[#allocation2 + $0x1a9] sm:$0xff] }
 0x14c   : > { %v1694_v61 = vpack.c.bf16 %v1680_v17, %v1679_v46  ;;  %v1618_v26 = vmul.f32 %v2522_v42, %v2302_v57  ;;  %v1345_v35 = vadd.f32 %v1329_v28, %v1297_v8  ;;  %v1346_v31 = vadd.f32 %v1330_v45, %v1298_v5 }
 0x14d   : > { %v1378_v54 = vmul.f32 %v1648_v0, %v2296_v40  ;;  %v1585_v37 = vadd.f32 %v1569_v20, %v1536_v11  ;;  %v1586_v7 = vadd.f32 %v1570_v12, %v1537_v60  ;;  %v1665_v1 = vmul.f32 %v2323_v4, %v1649_v55 }
 0x14e   : > { %2056 = vmatmul.mubr.bf16.vlgmr.msra.gmra.mrb[32].mxu0 %v1694_v61  ;;  %v1666_v52 = vmul.f32 %v2323_v4, %v1650_v6  ;;  %v1393_v48 = vadd.f32 %v1377_v38, %v1345_v35  ;;  %v1426_v15 = vmul.f32 %v1553_v44, %v2304_v58  ;;  %v1427_v34 = vmul.f32 %v1554_v41, %v2304_v58  ;;  %v1652_v61 = vld [vmem:[#allocation2 + $0x1b1] sm:$0xff] }
 0x14f   : > { %v1394_v2 = vadd.f32 %v1378_v54, %v1346_v31  ;;  %v1633_v13 = vadd.f32 %v1617_v18, %v1585_v37  ;;  %v1634_v14 = vadd.f32 %v1618_v26, %v1586_v7  ;;  %v1474_v0 = vmul.f32 %v2505_v16, %v2300_v56 }
 0x150   : > { %v1475_v63 = vmul.f32 %v2522_v42, %v2300_v56  ;;  %v1442_v39 = vadd.f32 %v1426_v15, %v1393_v48  ;;  %v1522_v4 = vmul.f32 %v1649_v55, %v2308_v62  ;;  %v1523_v49 = vmul.f32 %v1650_v6, %v2308_v62 }
 0x151   : > { %v1443_v47 = vadd.f32 %v1427_v34, %v1394_v2  ;;  %v1681_v50 = vadd.f32 %v1665_v1, %v1633_v13  ;;  %v1682_v10 = vadd.f32 %v1666_v52, %v1634_v14  ;;  %v1571_v25 = vmul.f32 %v1555_v30, %v2306_v59  ;;  %v1558_v52 = vld [vmem:[#allocation2 + $0x1cf] sm:$0xff] }
 0x152   : > { %v1572_v46 = vmul.f32 %v1556_v27, %v2306_v59  ;;  %v1490_v33 = vadd.f32 %v1474_v0, %v1442_v39  ;;  %v1299_v16 = vmul.f32 %v1553_v44, %v2289_v32  ;;  %v1300_v12 = vmul.f32 %v1554_v41, %v2289_v32 }
 0x153   : > { %v1491_v20 = vadd.f32 %v1475_v63, %v1443_v47  ;;  %v1695_v17 = vpack.c.bf16 %v1682_v10, %v1681_v50  ;;  %v1331_v19 = vmul.f32 %v1315_v3, %v2291_v36  ;;  %v1332_v8 = vmul.f32 %v2522_v42, %v2291_v36  ;;  %v1653_v10 = vld [vmem:[#allocation2 + $0x1c9] sm:$0xff] }
 0x154   : > { %v1379_v5 = vmul.f32 %v1649_v55, %v2296_v40  ;;  %v1538_v28 = vadd.f32 %v1522_v4, %v1490_v33  ;;  %v1619_v38 = vmul.f32 %v2302_v57, %v2567_v9  ;;  %v1380_v11 = vmul.f32 %v1650_v6, %v2296_v40  ;;  %v2778_v55 = vld [vmem:[%s2944_s2 + $0x8] ss:$0 sm:$0xff] }
 0x155   : > { %v1539_v45 = vadd.f32 %v1523_v49, %v1491_v20  ;;  %2059 = vmatprep.mubr.bf16.mxu1 %v1695_v17  ;;  %v1347_v44 = vadd.f32 %v1331_v19, %v1299_v16  ;;  %v1348_v41 = vadd.f32 %v1332_v8, %v1300_v12  ;;  %v1428_v60 = vmul.f32 %v1555_v30, %v2304_v58  ;;  %v1557_v6 = vld [vmem:[#allocation2 + $0x1c7] sm:$0xff] }
 0x156   : > { %v1429_v18 = vmul.f32 %v1556_v27, %v2304_v58  ;;  %v1587_v26 = vadd.f32 %v1571_v25, %v1538_v28  ;;  %v1620_v42 = vmul.f32 %v2302_v57, %v2581_v21  ;;  %v1667_v31 = vmul.f32 %v2778_v55, %v1651_v24  ;;  %v1654_v25 = vld [vmem:[#allocation2 + $0x1d1] sm:$0xff] }
 0x157   : > { %v1588_v35 = vadd.f32 %v1572_v46, %v1539_v45  ;;  %v1668_v54 = vmul.f32 %v2778_v55, %v1652_v61  ;;  %v1395_v37 = vadd.f32 %v1379_v5, %v1347_v44  ;;  %v1396_v7 = vadd.f32 %v1380_v11, %v1348_v41  ;;  %v1560_v41 = vld [vmem:[#allocation2 + $0x1ef] sm:$0xff] }
 0x158   : > { %v1476_v1 = vmul.f32 %v2300_v56, %v2567_v9  ;;  %v1635_v48 = vadd.f32 %v1619_v38, %v1587_v26  ;;  %v1477_v15 = vmul.f32 %v2300_v56, %v2581_v21  ;;  %v1524_v34 = vmul.f32 %v1651_v24, %v2308_v62 }
 0x159   : > { %v1636_v2 = vadd.f32 %v1620_v42, %v1588_v35  ;;  %v1444_v13 = vadd.f32 %v1428_v60, %v1395_v37  ;;  %v1445_v14 = vadd.f32 %v1429_v18, %v1396_v7  ;;  %v1525_v0 = vmul.f32 %v1652_v61, %v2308_v62  ;;  %v1319_v37 = vld [vmem:[#allocation2 + $0x1c8] sm:$0xff] }
 0x15a   : > { %v1573_v63 = vmul.f32 %v1557_v6, %v2306_v59  ;;  %v1683_v39 = vadd.f32 %v1667_v31, %v1635_v48  ;;  %v1574_v4 = vmul.f32 %v1558_v52, %v2306_v59  ;;  %v1301_v49 = vmul.f32 %v1555_v30, %v2289_v32 }
 0x15b   : > { %v1684_v47 = vadd.f32 %v1668_v54, %v1636_v2  ;;  %v1492_v3 = vadd.f32 %v1476_v1, %v1444_v13  ;;  %v1493_v50 = vadd.f32 %v1477_v15, %v1445_v14  ;;  %v1302_v46 = vmul.f32 %v1556_v27, %v2289_v32 }
 0x15c   : > { %v1333_v33 = vmul.f32 %v2291_v36, %v2567_v9  ;;  %v1621_v16 = vmul.f32 %v2556_v29, %v2302_v57  ;;  %v1334_v12 = vmul.f32 %v2291_v36, %v2581_v21  ;;  %v1381_v17 = vmul.f32 %v1651_v24, %v2296_v40  ;;  %v1559_v24 = vld [vmem:[#allocation2 + $0x1e7] sm:$0xff] }
 0x15d   : > { %v1696_v20 = vpack.c.bf16 %v1684_v47, %v1683_v39  ;;  %v1540_v19 = vadd.f32 %v1524_v34, %v1492_v3  ;;  %v1541_v30 = vadd.f32 %v1525_v0, %v1493_v50  ;;  %v1622_v8 = vmul.f32 %v2576_v51, %v2302_v57 }
 0x15e   : > { %v1349_v5 = vadd.f32 %v1333_v33, %v1301_v49  ;;  %v1669_v27 = vmul.f32 %v2778_v55, %v1653_v10  ;;  %v1670_v9 = vmul.f32 %v2778_v55, %v1654_v25  ;;  %v1350_v28 = vadd.f32 %v1334_v12, %v1302_v46  ;;  %v1655_v46 = vld [vmem:[#allocation2 + $0x1e9] sm:$0xff]  ;;  %v1656_v33 = vld [vmem:[#allocation2 + $0x1f1] sm:$0xff] }
 0x15f   : > { %2060 = vmatmul.mubr.bf16.vlgmr.msra.gmra.mrb[16].mxu1 %v1696_v20  ;;  %v1382_v45 = vmul.f32 %v1652_v61, %v2296_v40  ;;  %v1589_v38 = vadd.f32 %v1573_v63, %v1540_v19  ;;  %v1590_v11 = vadd.f32 %v1574_v4, %v1541_v30  ;;  %v1430_v21 = vmul.f32 %v1557_v6, %v2304_v58  ;;  %v1561_v30 = vld [vmem:[#allocation2 + $0x207] sm:$0xff] }
 0x160   : > { %v1397_v44 = vadd.f32 %v1381_v17, %v1349_v5  ;;  %v1431_v18 = vmul.f32 %v1558_v52, %v2304_v58  ;;  %v1478_v26 = vmul.f32 %v2556_v29, %v2300_v56  ;;  %v1479_v35 = vmul.f32 %v2576_v51, %v2300_v56 }
 0x161   : > { %v1398_v60 = vadd.f32 %v1382_v45, %v1350_v28  ;;  %v1637_v42 = vadd.f32 %v1621_v16, %v1589_v38  ;;  %v1638_v31 = vadd.f32 %v1622_v8, %v1590_v11  ;;  %v1526_v61 = vmul.f32 %v1653_v10, %v2308_v62 }
 0x162   : > { %v1446_v54 = vadd.f32 %v1430_v21, %v1397_v44  ;;  %v1527_v1 = vmul.f32 %v1654_v25, %v2308_v62  ;;  %v1575_v48 = vmul.f32 %v1559_v24, %v2306_v59  ;;  %v1576_v2 = vmul.f32 %v1560_v41, %v2306_v59 }
 0x163   : > { %v1447_v7 = vadd.f32 %v1431_v18, %v1398_v60  ;;  %v1685_v15 = vadd.f32 %v1669_v27, %v1637_v42  ;;  %v1686_v34 = vadd.f32 %v1670_v9, %v1638_v31  ;;  %v1303_v29 = vmul.f32 %v1557_v6, %v2289_v32  ;;  %v1562_v18 = vld [vmem:[#allocation2 + $0x20f] sm:$0xff] }
 0x164   : > { %v1494_v13 = vadd.f32 %v1478_v26, %v1446_v54  ;;  %v1304_v0 = vmul.f32 %v1558_v52, %v2289_v32  ;;  %v1335_v63 = vmul.f32 %v1319_v37, %v2291_v36  ;;  %v1336_v39 = vmul.f32 %v2576_v51, %v2291_v36 }
 0x165   : > { %v1495_v14 = vadd.f32 %v1479_v35, %v1447_v7  ;;  %v1697_v47 = vpack.c.bf16 %v1686_v34, %v1685_v15  ;;  %v1383_v49 = vmul.f32 %v1653_v10, %v2296_v40  ;;  %v1384_v3 = vmul.f32 %v1654_v25, %v2296_v40 }
 0x166   : > { %v1542_v4 = vadd.f32 %v1526_v61, %v1494_v13  ;;  %v1351_v20 = vadd.f32 %v1335_v63, %v1303_v29  ;;  %v1352_v16 = vadd.f32 %v1336_v39, %v1304_v0  ;;  %v1432_v6 = vmul.f32 %v1559_v24, %v2304_v58  ;;  %v1657_v13 = vld [vmem:[#allocation2 + $0x209] sm:$0xff]  ;;  %v1658_v29 = vld [vmem:[#allocation2 + $0x211] sm:$0xff] }
 0x167   : > { %v1543_v50 = vadd.f32 %v1527_v1, %v1495_v14  ;;  %2063 = vmatprep.mubr.bf16.mxu1 %v1697_v47  ;;  %v1623_v12 = vmul.f32 %v2302_v57, %v2613_v43  ;;  %v1433_v51 = vmul.f32 %v1560_v41, %v2304_v58  ;;  %v1624_v10 = vmul.f32 %v2302_v57, %v2630_v23 }
 0x168   : > { %v1591_v52 = vadd.f32 %v1575_v48, %v1542_v4  ;;  %v1399_v19 = vadd.f32 %v1383_v49, %v1351_v20  ;;  %v1400_v25 = vadd.f32 %v1384_v3, %v1352_v16  ;;  %v1671_v5 = vmul.f32 %v2778_v55, %v1655_v46 }
 0x169   : > { %v1592_v17 = vadd.f32 %v1576_v2, %v1543_v50  ;;  %v1672_v27 = vmul.f32 %v2778_v55, %v1656_v33  ;;  %v1480_v9 = vmul.f32 %v2300_v56, %v2613_v43  ;;  %v1481_v11 = vmul.f32 %v2300_v56, %v2630_v23  ;;  %v1563_v50 = vld [vmem:[#allocation2 + $0x227] sm:$0xff] }
 0x16a   : > { %v1639_v8 = vadd.f32 %v1623_v12, %v1591_v52  ;;  %v1448_v45 = vadd.f32 %v1432_v6, %v1399_v19  ;;  %v1449_v38 = vadd.f32 %v1433_v51, %v1400_v25  ;;  %v1528_v21 = vmul.f32 %v1655_v46, %v2308_v62 }
 0x16b   : > { %v1640_v28 = vadd.f32 %v1624_v10, %v1592_v17  ;;  %v1529_v60 = vmul.f32 %v1656_v33, %v2308_v62  ;;  %v1577_v26 = vmul.f32 %v1561_v30, %v2306_v59  ;;  %v1305_v54 = vmul.f32 %v1559_v24, %v2289_v32 }
 0x16c   : > { %v1687_v44 = vadd.f32 %v1671_v5, %v1639_v8  ;;  %v1496_v42 = vadd.f32 %v1480_v9, %v1448_v45  ;;  %v1497_v31 = vadd.f32 %v1481_v11, %v1449_v38  ;;  %v1306_v61 = vmul.f32 %v1560_v41, %v2289_v32  ;;  %v1659_v8 = vld [vmem:[#allocation2 + $0x229] sm:$0xff]  ;;  %v1660_v5 = vld [vmem:[#allocation2 + $0x231] sm:$0xff]  ;;  %v2122_v9 = vld [vmem:[#allocation2] sm:$0xff] }
 0x16d   : > { %v1688_v35 = vadd.f32 %v1672_v27, %v1640_v28  ;;  %v1337_v37 = vmul.f32 %v2291_v36, %v2613_v43  ;;  %v1338_v7 = vmul.f32 %v2291_v36, %v2630_v23  ;;  %v1385_v1 = vmul.f32 %v1655_v46, %v2296_v40  ;;  %v1564_v46 = vld [vmem:[#allocation2 + $0x22f] sm:$0xff] }
 0x16e   : > { %v1544_v2 = vadd.f32 %v1528_v21, %v1496_v42  ;;  %v1545_v15 = vadd.f32 %v1529_v60, %v1497_v31  ;;  %v1578_v34 = vmul.f32 %v1562_v18, %v2306_v59  ;;  %v1386_v24 = vmul.f32 %v1656_v33, %v2296_v40  ;;  %v2868_v60 = vld [vmem:[%s2946_s4] ss:$0 sm:$0xff] }
 0x16f   : > { %v1698_v48 = vpack.c.bf16 %v1688_v35, %v1687_v44  ;;  %v1353_v14 = vadd.f32 %v1337_v37, %v1305_v54  ;;  %v1354_v0 = vadd.f32 %v1338_v7, %v1306_v61  ;;  %v1625_v43 = vmul.f32 %v2604_v22, %v2302_v57 }
 0x170   : > { %v1593_v32 = vadd.f32 %v1577_v26, %v1544_v2  ;;  %v1594_v41 = vadd.f32 %v1578_v34, %v1545_v15  ;;  %v1626_v36 = vmul.f32 %v2621_v53, %v2302_v57  ;;  %v1434_v39 = vmul.f32 %v1561_v30, %v2304_v58 }
 0x171   : > { %2064 = vmatmul.mubr.bf16.gmra.mrb[20].mxu1 %v1698_v48  ;;  %v1401_v23 = vadd.f32 %v1385_v1, %v1353_v14  ;;  %v1402_v63 = vadd.f32 %v1386_v24, %v1354_v0  ;;  %v1435_v47 = vmul.f32 %v1562_v18, %v2304_v58  ;;  %v1673_v3 = vmul.f32 %v2778_v55, %v1657_v13 }
 0x172   : > { %v1641_v4 = vadd.f32 %v1625_v43, %v1593_v32  ;;  %v1642_v49 = vadd.f32 %v1626_v36, %v1594_v41  ;;  %v1674_v40 = vmul.f32 %v2778_v55, %v1658_v29  ;;  %v1482_v16 = vmul.f32 %v2604_v22, %v2300_v56 }
 0x173   : > { %v1450_v33 = vadd.f32 %v1434_v39, %v1401_v23  ;;  %v1451_v20 = vadd.f32 %v1435_v47, %v1402_v63  ;;  %v1483_v6 = vmul.f32 %v2621_v53, %v2300_v56  ;;  %v1530_v58 = vmul.f32 %v1657_v13, %v2308_v62 }
 0x174   : > { %v1689_v52 = vadd.f32 %v1673_v3, %v1641_v4  ;;  %v1690_v12 = vadd.f32 %v1674_v40, %v1642_v49  ;;  %v1531_v51 = vmul.f32 %v1658_v29, %v2308_v62  ;;  %v1579_v19 = vmul.f32 %v1563_v50, %v2306_v59 }
 0x175   : > { %v1498_v17 = vadd.f32 %v1482_v16, %v1450_v33  ;;  %v1499_v10 = vadd.f32 %v1483_v6, %v1451_v20  ;;  %v1580_v25 = vmul.f32 %v1564_v46, %v2306_v59  ;;  %v1627_v56 = vmul.f32 %v2122_v9, %v2302_v57 }
 0x176   : > { %v1699_v30 = vpack.c.bf16 %v1690_v12, %v1689_v52  ;;  %v1675_v62 = vmul.f32 %v2778_v55, %v1659_v8  ;;  %v1676_v45 = vmul.f32 %v2778_v55, %v1660_v5 }
 0x177   : > { %v1546_v22 = vadd.f32 %v1530_v58, %v1498_v17  ;;  %v1547_v27 = vadd.f32 %v1531_v51, %v1499_v10 }
 0x178   : > { %2067 = vmatprep.mubr.bf16.mxu1 %v1699_v30 }
 0x179   : > { %v1595_v53 = vadd.f32 %v1579_v19, %v1546_v22  ;;  %v1596_v28 = vadd.f32 %v1580_v25, %v1547_v27 }
 0x17b   : > { %v1643_v38 = vadd.f32 %v1627_v56, %v1595_v53  ;;  %v1644_v11 = vadd.f32 %v1627_v56, %v1596_v28 }
 0x17d   : > { %v1691_v44 = vadd.f32 %v1675_v62, %v1643_v38  ;;  %v1692_v59 = vadd.f32 %v1676_v45, %v1644_v11 }
 0x17f   : > { %v1700_v21 = vpack.c.bf16 %v1692_v59, %v1691_v44 }
 0x181   : > { %2068 = vmatmul.mubr.bf16.gmra.mrb[24].mxu1 %v1700_v21 }
 0x1db   : > { %v2025_v57 = vpop.f32.mrb[0].mxu1 }
 0x1dc   : > { %v1204_v55 = vadd.f32 %v2025_v57, %v2868_v60  ;;  %v1195_v18 = vpop.f32.mrb[1].mxu1 }
 0x1dd   : > { %v1196_v26 = vadd.f32 %v2868_v60, %v1195_v18  ;;  %v2026_v35 = vpop.f32.mrb[2].mxu1 }
 0x1de   : > { %1260 = vst [vmem:[%s2873_s30 + $0x10] sm:$0xff] %v1204_v55  ;;  %v1207_v42 = vadd.f32 %v2026_v35, %v2868_v60  ;;  %v1198_v31 = vpop.f32.mrb[3].mxu1 }
 0x1df   : > { %1258 = vst [vmem:[%s2873_s30] sm:$0xff] %v1196_v26  ;;  %v1199_v54 = vadd.f32 %v2868_v60, %v1198_v31 }
 0x1e0   : > { %1261 = vst [vmem:[%s2873_s30 + $0x18] sm:$0xff] %v1207_v42 }
 0x1e1   : > { %1259 = vst [vmem:[%s2873_s30 + $0x8] sm:$0xff] %v1199_v54 }
 0x1eb   : > { %v2029_v61 = vpop.f32.mrb[4].mxu1 }
 0x1ec   : > { %v1220_v37 = vadd.f32 %v2029_v61, %v2868_v60  ;;  %v1211_v7 = vpop.f32.mrb[5].mxu1 }
 0x1ed   : > { %v1212_v1 = vadd.f32 %v2868_v60, %v1211_v7  ;;  %v2030_v48 = vpop.f32.mrb[6].mxu1 }
 0x1ee   : > { %1264 = vst [vmem:[%s2873_s30 + $0x30] sm:$0xff] %v1220_v37  ;;  %v1223_v2 = vadd.f32 %v2030_v48, %v2868_v60  ;;  %v1214_v15 = vpop.f32.mrb[7].mxu1 }
 0x1ef   : > { %1262 = vst [vmem:[%s2873_s30 + $0x20] sm:$0xff] %v1212_v1  ;;  %v1215_v34 = vadd.f32 %v2868_v60, %v1214_v15 }
 0x1f0   : > { %1265 = vst [vmem:[%s2873_s30 + $0x38] sm:$0xff] %v1223_v2 }
 0x1f1   : > { %1263 = vst [vmem:[%s2873_s30 + $0x28] sm:$0xff] %v1215_v34 }
 0x1fd   : > { %v2033_v13 = vpop.f32.mrb[8].mxu1 }
 0x1fe   : > { %v1236_v29 = vadd.f32 %v2033_v13, %v2868_v60  ;;  %v1227_v14 = vpop.f32.mrb[9].mxu1 }
 0x1ff   : > { %v1228_v0 = vadd.f32 %v2868_v60, %v1227_v14  ;;  %v2034_v24 = vpop.f32.mrb[10].mxu1 }
 0x200   : > { %1268 = vst [vmem:[%s2873_s30 + $0x50] sm:$0xff] %v1236_v29  ;;  %v1239_v32 = vadd.f32 %v2034_v24, %v2868_v60  ;;  %v1230_v41 = vpop.f32.mrb[11].mxu1 }
 0x201   : > { %1266 = vst [vmem:[%s2873_s30 + $0x40] sm:$0xff] %v1228_v0  ;;  %v1231_v43 = vadd.f32 %v2868_v60, %v1230_v41 }
 0x202   : > { %1269 = vst [vmem:[%s2873_s30 + $0x58] sm:$0xff] %v1239_v32 }
 0x203   : > { %1267 = vst [vmem:[%s2873_s30 + $0x48] sm:$0xff] %v1231_v43 }
 0x20f   : > { %v2037_v36 = vpop.f32.mrb[12].mxu1 }
 0x210   : > { %v1252_v23 = vadd.f32 %v2037_v36, %v2868_v60  ;;  %v1243_v63 = vpop.f32.mrb[13].mxu1 }
 0x211   : > { %v1244_v39 = vadd.f32 %v2868_v60, %v1243_v63  ;;  %v2038_v47 = vpop.f32.mrb[14].mxu1 }
 0x212   : > { %1272 = vst [vmem:[%s2873_s30 + $0x70] sm:$0xff] %v1252_v23  ;;  %v1255_v4 = vadd.f32 %v2038_v47, %v2868_v60  ;;  %v1246_v49 = vpop.f32.mrb[15].mxu1 }
 0x213   : > { %1270 = vst [vmem:[%s2873_s30 + $0x60] sm:$0xff] %v1244_v39  ;;  %v1247_v3 = vadd.f32 %v2868_v60, %v1246_v49 }
 0x214   : > { %1273 = vst [vmem:[%s2873_s30 + $0x78] sm:$0xff] %v1255_v4 }
 0x215   : > { %1271 = vst [vmem:[%s2873_s30 + $0x68] sm:$0xff] %v1247_v3 }
 0x221   : > { %v2057_v40 = vpop.f32.mrb[32].mxu0 }
 0x222   : > { %v1744_v50 = vadd.f32 %v2057_v40, %v2868_v60  ;;  %v1735_v46 = vpop.f32.mrb[33].mxu0 }
 0x223   : > { %v1736_v33 = vadd.f32 %v2868_v60, %v1735_v46  ;;  %v2058_v20 = vpop.f32.mrb[34].mxu0 }
 0x224   : > { %1800 = vst [vmem:[%s2873_s30 + $0x90] sm:$0xff] %v1744_v50  ;;  %v1747_v16 = vadd.f32 %v2058_v20, %v2868_v60  ;;  %v1738_v6 = vpop.f32.mrb[35].mxu0 }
 0x225   : > { %1798 = vst [vmem:[%s2873_s30 + $0x80] sm:$0xff] %v1736_v33  ;;  %v1739_v52 = vadd.f32 %v2868_v60, %v1738_v6 }
 0x226   : > { %1801 = vst [vmem:[%s2873_s30 + $0x98] sm:$0xff] %v1747_v16 }
 0x227   : > { %1799 = vst [vmem:[%s2873_s30 + $0x88] sm:$0xff] %v1739_v52 }
 0x232   : > { %v2061_v12 = vpop.f32.mrb[16].mxu1 }
 0x233   : > { %v1760_v58 = vadd.f32 %v2061_v12, %v2868_v60  ;;  %v1751_v51 = vpop.f32.mrb[17].mxu1 }
 0x234   : > { %v1752_v17 = vadd.f32 %v2868_v60, %v1751_v51  ;;  %v2062_v10 = vpop.f32.mrb[18].mxu1 }
 0x235   : > { %1804 = vst [vmem:[%s2873_s30 + $0xb0] sm:$0xff] %v1760_v58  ;;  %v1763_v19 = vadd.f32 %v2062_v10, %v2868_v60  ;;  %v1754_v25 = vpop.f32.mrb[19].mxu1 }
 0x236   : > { %1802 = vst [vmem:[%s2873_s30 + $0xa0] sm:$0xff] %v1752_v17  ;;  %v1755_v30 = vadd.f32 %v2868_v60, %v1754_v25 }
 0x237   : > { %1805 = vst [vmem:[%s2873_s30 + $0xb8] sm:$0xff] %v1763_v19 }
 0x238   : > { %1803 = vst [vmem:[%s2873_s30 + $0xa8] sm:$0xff] %v1755_v30 }
 0x244   : > { %v2065_v8 = vpop.f32.mrb[20].mxu1 }
 0x245   : > { %v1776_v5 = vadd.f32 %v2065_v8, %v2868_v60  ;;  %v1767_v22 = vpop.f32.mrb[21].mxu1 }
 0x246   : > { %v1768_v27 = vadd.f32 %v2868_v60, %v1767_v22  ;;  %v2066_v9 = vpop.f32.mrb[22].mxu1 }
 0x247   : > { %1808 = vst [vmem:[%s2873_s30 + $0xd0] sm:$0xff] %v1776_v5  ;;  %v1779_v56 = vadd.f32 %v2066_v9, %v2868_v60  ;;  %v1770_v53 = vpop.f32.mrb[23].mxu1 }
 0x248   : > { %1806 = vst [vmem:[%s2873_s30 + $0xc0] sm:$0xff] %v1768_v27  ;;  %v1771_v28 = vadd.f32 %v2868_v60, %v1770_v53 }
 0x249   : > { %1809 = vst [vmem:[%s2873_s30 + $0xd8] sm:$0xff] %v1779_v56 }
 0x24a   : > { %1807 = vst [vmem:[%s2873_s30 + $0xc8] sm:$0xff] %v1771_v28 }
 0x254   : > { %v2069_v62 = vpop.f32.mrb[24].mxu1 }
 0x255   : > { %v1792_v45 = vadd.f32 %v2069_v62, %v2868_v60  ;;  %v1783_v38 = vpop.f32.mrb[25].mxu1 }
 0x256   : > { %v1784_v11 = vadd.f32 %v2868_v60, %v1783_v38  ;;  %v2070_v44 = vpop.f32.mrb[26].mxu1 }
 0x257   : > { %1812 = vst [vmem:[%s2873_s30 + $0xf0] sm:$0xff] %v1792_v45  ;;  %v1795_v59 = vadd.f32 %v2070_v44, %v2868_v60  ;;  %v1786_v21 = vpop.f32.mrb[27].mxu1 }
 0x258   : > { %1810 = vst [vmem:[%s2873_s30 + $0xe0] sm:$0xff] %v1784_v11  ;;  %v1787_v57 = vadd.f32 %v2868_v60, %v1786_v21 }
 0x259   : > { %1813 = vst [vmem:[%s2873_s30 + $0xf8] sm:$0xff] %v1795_v59 }
 0x25a   : > { %1811 = vst [vmem:[%s2873_s30 + $0xe8] sm:$0xff] %v1787_v57 }
 0x25b PF: > { %s15_s18 = sadd.s32 1, %s2129_s18  }
 0x25c   : > { %p12_p4 = scmp.ge.s32.totalorder %s15_s18, 4  }
 0x25e   :  { %14 = sbr.rel (!%p12_p4) target bundleno = 1 (0x1), region = 76 }

</bundles_post_ra>
